<compile_context>
chip_gen: v7x
topology: tpu7x:2x2x1
jax: 0.10.0
libtpu: 0.0.40
codegen_flags: <defaults>
</compile_context>

<pallas_src>
import functools
import math

import jax
import jax.numpy as jnp
from jax.experimental import pallas as pl
from jax.experimental.pallas import tpu as pltpu

POINT_CLOUD_RANGE = (-8.0, -19.2, -4.0, 30.4, 19.2, 4.0)
IMG_LOOK_DIM = 128  # stand-in embed dim for the (undefined) SpatialCrossAttention


# ---------------------------------------------------------------------------
# Fused kernel: lidar_look_module_atten + attention-weighted 9-point samples
#               + lidar_look_module_MLP, one grid step per batch element.
# ---------------------------------------------------------------------------
def _fused_look_kernel(xatt_ref, raw_ref, w1_ref, b1_ref, w2_ref, b2_ref,
                       w3_ref, b3_ref, w4_ref, b4_ref, o_ref, *, T):
    # ---- lidar_look_module_atten: Sigmoid(Linear(256,512)(ReLU(Linear(.,256)(x)))) ----
    x = xatt_ref[0, :, :]                                         # (T, 256) bf16 (zero-padded)
    h = jnp.dot(x, w1_ref[...], preferred_element_type=jnp.float32) + b1_ref[...]
    h = jnp.maximum(h, 0.0)                                       # ReLU, f32
    z = jnp.dot(h.astype(jnp.bfloat16), w2_ref[...],
                preferred_element_type=jnp.float32) + b2_ref[...]
    attn = pl.reciprocal(1.0 + jnp.exp(-z), approx=True)          # sigmoid via EUP, (T, 512) f32

    # ---- attention-weight the bilinear samples (rows are point-major: p*T + t) ----
    # NOTE: sample points that fall fully out of range arrive with all-zero
    # bilinear weights (set in the wrapper), so they contribute exactly 0 here.
    attn9 = jnp.concatenate([attn] * 9, axis=0)                   # (9T, 512) f32
    s = raw_ref[0, :, :] * attn9                                  # (9T, 512) f32 (VPU)

    # ---- lidar_look_module_MLP[0:2]: Linear(512,128)+ReLU, batched over all 9T rows ----
    h1 = jnp.dot(s.astype(jnp.bfloat16), w3_ref[...],
                 preferred_element_type=jnp.float32) + b3_ref[...]
    h1 = jnp.maximum(h1, 0.0)                                     # (9T, 128) f32

    # ---- Flatten(start_dim=2)+Linear(9*128,256)+ReLU as 9 accumulated (T,128)@(128,256) ----
    acc = jnp.broadcast_to(b4_ref[...], (T, 256))                 # (T, 256) f32
    for p in range(9):
        hp = h1[p * T:(p + 1) * T, :].astype(jnp.bfloat16)        # static slice, (T, 128)
        acc = acc + jnp.dot(hp, w4_ref[p], preferred_element_type=jnp.float32)
    o_ref[0, :, :] = jnp.maximum(acc, 0.0)                        # single lane-dense store


def _fused_look_pallas(xp, raw_pm, w1p, b1, w2, b2, w3, b3, w4r, b4):
    """xp: (bs,T,256) bf16, raw_pm: (bs,9T,512) f32 -> (bs,T,256) f32."""
    bs, T, kp = xp.shape
    nine_t, C = raw_pm.shape[1], raw_pm.shape[2]
    kernel = functools.partial(_fused_look_kernel, T=T)
    return pl.pallas_call(
        kernel,
        out_shape=jax.ShapeDtypeStruct((bs, T, 256), jnp.float32),
        grid=(bs,),
        in_specs=[
            pl.BlockSpec((1, T, kp), lambda b: (b, 0, 0)),        # padded atten-MLP input
            pl.BlockSpec((1, nine_t, C), lambda b: (b, 0, 0)),    # gathered samples (p-major)
            pl.BlockSpec((kp, 256), lambda b: (0, 0)),            # W1 (zero-padded rows)
            pl.BlockSpec((1, 256), lambda b: (0, 0)),             # b1
            pl.BlockSpec((256, 512), lambda b: (0, 0)),           # W2
            pl.BlockSpec((1, 512), lambda b: (0, 0)),             # b2
            pl.BlockSpec((C, 128), lambda b: (0, 0)),             # W3
            pl.BlockSpec((1, 128), lambda b: (0, 0)),             # b3
            pl.BlockSpec((9, 128, 256), lambda b: (0, 0, 0)),     # W4 regrouped per point
            pl.BlockSpec((1, 256), lambda b: (0, 0)),             # b4
        ],
        out_specs=pl.BlockSpec((1, T, 256), lambda b: (b, 0, 0)),
        compiler_params=pltpu.CompilerParams(dimension_semantics=("parallel",)),
    )(xp, raw_pm, w1p, b1, w2, b2, w3, b3, w4r, b4)


# ---------------------------------------------------------------------------
# Glue: exact F.grid_sample addressing (align_corners=False, padding_mode=zeros)
# for the 3x3 offset pattern of obtain_lidar_look_features.
# ---------------------------------------------------------------------------
def _grid_sample_coords(wp, H, Wsp):
    pcr = POINT_CLOUD_RANGE
    offs = jnp.array([0.0, -0.1, 0.1], jnp.float32)
    bs, T, _ = wp.shape
    rx = 1.0 - jnp.clip((wp[..., 0:1] - pcr[0]) / (pcr[3] - pcr[0]) + offs, 0.0, 1.0)  # (bs,T,3)
    ry = jnp.clip((wp[..., 1:2] - pcr[1]) / (pcr[4] - pcr[1]) + offs, 0.0, 1.0)        # (bs,T,3)
    gx = jnp.broadcast_to(rx[..., :, None], (bs, T, 3, 3)).reshape(bs, T, 9) * 2.0 - 1.0
    gy = jnp.broadcast_to(ry[..., None, :], (bs, T, 3, 3)).reshape(bs, T, 9) * 2.0 - 1.0
    x_pix = ((gx + 1.0) * Wsp - 1.0) * 0.5
    y_pix = ((gy + 1.0) * H - 1.0) * 0.5
    x0 = jnp.floor(x_pix)
    y0 = jnp.floor(y_pix)
    wx1 = x_pix - x0
    wx0 = 1.0 - wx1
    wy1 = y_pix - y0
    wy0 = 1.0 - wy1

    def corner(yf, xf, wy, wx):
        # out-of-range corners get weight 0 (zero padding); the clipped index is
        # only a harmless placeholder read.
        valid = (yf >= 0) & (yf <= H - 1) & (xf >= 0) & (xf <= Wsp - 1)
        yi = jnp.clip(yf, 0, H - 1).astype(jnp.int32)
        xi = jnp.clip(xf, 0, Wsp - 1).astype(jnp.int32)
        return yi * Wsp + xi, jnp.where(valid, wy * wx, 0.0)

    i00, w00 = corner(y0, x0, wy0, wx0)
    i01, w01 = corner(y0, x0 + 1.0, wy0, wx1)
    i10, w10 = corner(y0 + 1.0, x0, wy1, wx0)
    i11, w11 = corner(y0 + 1.0, x0 + 1.0, wy1, wx1)
    idx = jnp.stack([i00, i01, i10, i11], axis=-1)   # (bs, T, 9, 4) int32 flat spatial idx
    wgt = jnp.stack([w00, w01, w10, w11], axis=-1)   # (bs, T, 9, 4) f32 bilinear weights
    return idx, wgt


# ---------------------------------------------------------------------------
# LookModule.forward (lidar branch; camera branch stubbed, see TODO)
# ---------------------------------------------------------------------------
def look_module_forward(current_wp, current_ctrl_softplus, temporal_embedding,
                        lidar_feat_with_high_resolution, params):
    bs, T, _ = current_wp.shape
    C, H, Wsp = lidar_feat_with_high_resolution.shape[1:]

    # ---- attention-MLP input, zero-padded 134 -> 256 on the contraction dim ----
    x = jnp.concatenate(
        [current_wp, current_ctrl_softplus,
         jnp.broadcast_to(temporal_embedding[None],
                          (bs, T, temporal_embedding.shape[-1]))], axis=-1)
    din = x.shape[-1]
    kp = 256
    xp = jnp.zeros((bs, T, kp), jnp.float32).at[..., :din].set(x.astype(jnp.float32))
    w1p = jnp.zeros((kp, params["w1"].shape[1]), jnp.float32).at[:din].set(params["w1"])

    # ---- gather only the 36*T lidar rows grid_sample touches (no full transpose) ----
    idx, wgt = _grid_sample_coords(current_wp, H, Wsp)                      # (bs,T,9,4)
    feat_c_hw = lidar_feat_with_high_resolution.reshape(bs, C, H * Wsp).astype(jnp.float32)
    g = jax.vmap(lambda f, i: jnp.take(f, i, axis=1))(feat_c_hw, idx.reshape(bs, -1))
    g = jnp.transpose(g, (0, 2, 1))                                         # (bs, T*9*4, C)
    raw = jnp.sum(g.reshape(bs, T * 9, 4, C) * wgt.reshape(bs, T * 9, 4, 1), axis=2)
    # reorder to point-major rows (p*T + t) so the W4 stage slices contiguously
    raw_pm = raw.reshape(bs, T, 9, C).transpose(0, 2, 1, 3).reshape(bs, 9 * T, C)

    bf = jnp.bfloat16
    lidar_look = _fused_look_pallas(
        xp.astype(bf), raw_pm,
        w1p.astype(bf), params["b1"].reshape(1, -1).astype(jnp.float32),
        params["w2"].astype(bf), params["b2"].reshape(1, -1).astype(jnp.float32),
        params["w3"].astype(bf), params["b3"].reshape(1, -1).astype(jnp.float32),
        params["w4"].reshape(9, 128, 256).astype(bf),
        params["b4"].reshape(1, -1).astype(jnp.float32))

    # TODO(synk): SpatialCrossAttention (cam_look_module) is not defined in the
    # provided source and obtain_cam_ref_points_query relies on data-dependent
    # nonzero()/max_len rebatching; the image-look branch is stood in by zeros.
    img_look_features = jnp.zeros((bs, T, IMG_LOOK_DIM), jnp.float32)

    # forward returns cat([img_look_features, zeros_like(lidar_look_features)], -1)
    look_features = jnp.concatenate([img_look_features, jnp.zeros_like(lidar_look)],
                                    axis=-1)
    return look_features, lidar_look


# ---------------------------------------------------------------------------
# Pure-JAX f32 reference for the lidar branch (same math as the PyTorch module).
# NOTE: grid_sample addressing is shared with the Pallas path; it is not
# validated against torch.nn.functional.grid_sample here.
# ---------------------------------------------------------------------------
def _reference_lidar_branch(current_wp, current_ctrl, temb, lidar_feat_nchw, params):
    bs, T, _ = current_wp.shape
    C, H, Wsp = lidar_feat_nchw.shape[1:]
    x = jnp.concatenate([current_wp, current_ctrl,
                         jnp.broadcast_to(temb[None], (bs, T, temb.shape[-1]))], -1)
    h = jax.nn.relu(x @ params["w1"] + params["b1"])
    attn = jax.nn.sigmoid(h @ params["w2"] + params["b2"])
    idx, wgt = _grid_sample_coords(current_wp, H, Wsp)
    feat_flat = jnp.transpose(lidar_feat_nchw, (0, 2, 3, 1)).reshape(bs, H * Wsp, C)

    def per_b(fb, ib, wb, ab):
        g = fb[ib]                                    # (T, 9, 4, C)
        s = jnp.sum(wb[..., None] * g, axis=2)        # (T, 9, C)
        s = s * ab[:, None, :]
        h1 = jax.nn.relu(s @ params["w3"] + params["b3"])
        h1f = h1.reshape(T, 9 * 128)
        return jax.nn.relu(h1f @ params["w4"] + params["b4"])

    return jax.vmap(per_b)(feat_flat, idx, wgt, attn)


if __name__ == "__main__":
    key = jax.random.PRNGKey(0)
    ks = jax.random.split(key, 10)
    bs, T, H, Wsp, C = 2, 4, 16, 16, 512

    current_wp = jnp.stack(
        [jax.random.uniform(ks[0], (bs, T), minval=-6.0, maxval=28.0),
         jax.random.uniform(ks[1], (bs, T), minval=-18.0, maxval=18.0)], axis=-1)
    current_ctrl_softplus = jax.nn.softplus(jax.random.normal(ks[2], (bs, T, 4)))
    temporal_embedding = 0.1 * jax.random.normal(ks[3], (T, 128))
    lidar_feat_with_high_resolution = jax.random.normal(ks[4], (bs, C, H, Wsp),
                                                        jnp.float32)

    def init_linear(k, din, dout):
        k1, k2 = jax.random.split(k)
        s = 1.0 / math.sqrt(din)
        return (jax.random.uniform(k1, (din, dout), jnp.float32, -s, s),
                jax.random.uniform(k2, (dout,), jnp.float32, -s, s))

    w1, b1 = init_linear(ks[5], 6 + 128, 256)     # lidar_look_module_atten[0]
    w2, b2 = init_linear(ks[6], 256, 512)         # lidar_look_module_atten[2]
    w3, b3 = init_linear(ks[7], 512, 128)         # lidar_look_module_MLP[0]
    w4, b4 = init_linear(ks[8], 9 * 128, 256)     # lidar_look_module_MLP[3]
    params = dict(w1=w1, b1=b1, w2=w2, b2=b2, w3=w3, b3=b3, w4=w4, b4=b4)

    look_features, lidar_look = jax.jit(look_module_forward)(
        current_wp, current_ctrl_softplus, temporal_embedding,
        lidar_feat_with_high_resolution, params)
    look_features = jax.block_until_ready(look_features)
    lidar_look = jax.block_until_ready(lidar_look)

    ref = _reference_lidar_branch(current_wp, current_ctrl_softplus,
                                  temporal_embedding,
                                  lidar_feat_with_high_resolution, params)
    assert look_features.shape == (bs, T, IMG_LOOK_DIM + 256)
    assert bool(jnp.all(jnp.isfinite(lidar_look)))
    max_diff = float(jnp.max(jnp.abs(lidar_look - ref)))
    assert max_diff < 0.1, f"pallas vs reference mismatch: {max_diff}"
    print("KERNEL_OK")
</pallas_src>

<mosaic_0001>
module attributes {stable_mosaic.version = 11 : i64} {
  func.func @_fused_look_kernel(%arg0: i32, %arg1: memref<1x4x256xbf16, #tpu.memory_space<vmem>>, %arg2: memref<1x36x512xf32, #tpu.memory_space<vmem>>, %arg3: memref<256x256xbf16, #tpu.memory_space<vmem>>, %arg4: memref<1x256xf32, #tpu.memory_space<vmem>>, %arg5: memref<256x512xbf16, #tpu.memory_space<vmem>>, %arg6: memref<1x512xf32, #tpu.memory_space<vmem>>, %arg7: memref<512x128xbf16, #tpu.memory_space<vmem>>, %arg8: memref<1x128xf32, #tpu.memory_space<vmem>>, %arg9: memref<9x128x256xbf16, #tpu.memory_space<vmem>>, %arg10: memref<1x256xf32, #tpu.memory_space<vmem>>, %arg11: memref<1x4x256xf32, #tpu.memory_space<vmem>>) attributes {dimension_semantics = [#tpu.dimension_semantics<parallel>], iteration_bounds = array<i64: 2>, scalar_prefetch = 0 : i64, scratch_operands = 0 : i64, tpu.core_type = #tpu.core_type<tc>, window_params = [{transform_indices = @transform_0, window_bounds = array<i64: 1, 4, 256>}, {transform_indices = @transform_1, window_bounds = array<i64: 1, 36, 512>}, {pipeline_mode = #tpu.pipeline_mode<synchronous>, transform_indices = @transform_2, window_bounds = array<i64: 256, 256>}, {pipeline_mode = #tpu.pipeline_mode<synchronous>, transform_indices = @transform_3, window_bounds = array<i64: 1, 256>}, {pipeline_mode = #tpu.pipeline_mode<synchronous>, transform_indices = @transform_4, window_bounds = array<i64: 256, 512>}, {pipeline_mode = #tpu.pipeline_mode<synchronous>, transform_indices = @transform_5, window_bounds = array<i64: 1, 512>}, {pipeline_mode = #tpu.pipeline_mode<synchronous>, transform_indices = @transform_6, window_bounds = array<i64: 512, 128>}, {pipeline_mode = #tpu.pipeline_mode<synchronous>, transform_indices = @transform_7, window_bounds = array<i64: 1, 128>}, {pipeline_mode = #tpu.pipeline_mode<synchronous>, transform_indices = @transform_8, window_bounds = array<i64: 9, 128, 256>}, {pipeline_mode = #tpu.pipeline_mode<synchronous>, transform_indices = @transform_9, window_bounds = array<i64: 1, 256>}, {transform_indices = @transform_10, window_bounds = array<i64: 1, 4, 256>}]} {
    %c0 = arith.constant 0 : index
    %c0_0 = arith.constant 0 : index
    %c0_1 = arith.constant 0 : index
    %0 = vector.load %arg1[%c0, %c0_0, %c0_1] : memref<1x4x256xbf16, #tpu.memory_space<vmem>>, vector<1x4x256xbf16>
    %1 = vector.shape_cast %0 : vector<1x4x256xbf16> to vector<4x256xbf16>
    %c0_2 = arith.constant 0 : index
    %c0_3 = arith.constant 0 : index
    %2 = vector.load %arg3[%c0_2, %c0_3] : memref<256x256xbf16, #tpu.memory_space<vmem>>, vector<256x256xbf16>
    %cst = arith.constant dense<0.000000e+00> : vector<4x256xf32>
    %3 = tpu.matmul %1, %2, %cst {dimension_numbers = #tpu.dot_dimension_numbers<[1], [0], [0], [1], [0, 0, 1, 1], [], []>} : vector<4x256xbf16>, vector<256x256xbf16>, vector<4x256xf32> -> vector<4x256xf32>
    %c0_4 = arith.constant 0 : index
    %c0_5 = arith.constant 0 : index
    %4 = vector.load %arg4[%c0_4, %c0_5] : memref<1x256xf32, #tpu.memory_space<vmem>>, vector<1x256xf32>
    %5 = vector.broadcast %4 : vector<1x256xf32> to vector<4x256xf32>
    %6 = arith.addf %3, %5 : vector<4x256xf32>
    %cst_6 = arith.constant 0.000000e+00 : f32
    %7 = vector.broadcast %cst_6 : f32 to vector<4x256xf32>
    %8 = arith.maximumf %6, %7 : vector<4x256xf32>
    %9 = arith.truncf %8 : vector<4x256xf32> to vector<4x256xbf16>
    %c0_7 = arith.constant 0 : index
    %c0_8 = arith.constant 0 : index
    %10 = vector.load %arg5[%c0_7, %c0_8] : memref<256x512xbf16, #tpu.memory_space<vmem>>, vector<256x512xbf16>
    %cst_9 = arith.constant dense<0.000000e+00> : vector<4x512xf32>
    %11 = tpu.matmul %9, %10, %cst_9 {dimension_numbers = #tpu.dot_dimension_numbers<[1], [0], [0], [1], [0, 0, 1, 1], [], []>} : vector<4x256xbf16>, vector<256x512xbf16>, vector<4x512xf32> -> vector<4x512xf32>
    %c0_10 = arith.constant 0 : index
    %c0_11 = arith.constant 0 : index
    %12 = vector.load %arg6[%c0_10, %c0_11] : memref<1x512xf32, #tpu.memory_space<vmem>>, vector<1x512xf32>
    %13 = vector.broadcast %12 : vector<1x512xf32> to vector<4x512xf32>
    %14 = arith.addf %11, %13 : vector<4x512xf32>
    %cst_12 = arith.constant 0.000000e+00 : f32
    %15 = vector.broadcast %cst_12 : f32 to vector<4x512xf32>
    %16 = arith.subf %15, %14 : vector<4x512xf32>
    %17 = math.exp %16 : vector<4x512xf32>
    %cst_13 = arith.constant 1.000000e+00 : f32
    %18 = vector.broadcast %cst_13 : f32 to vector<4x512xf32>
    %19 = arith.addf %18, %17 : vector<4x512xf32>
    %20 = tpu.reciprocal %19 {approx = true} : vector<4x512xf32> -> vector<4x512xf32>
    %21 = tpu.concatenate %20, %20, %20, %20, %20, %20, %20, %20, %20 in 0 : vector<4x512xf32>, vector<4x512xf32>, vector<4x512xf32>, vector<4x512xf32>, vector<4x512xf32>, vector<4x512xf32>, vector<4x512xf32>, vector<4x512xf32>, vector<4x512xf32> -> vector<36x512xf32>
    %c0_14 = arith.constant 0 : index
    %c0_15 = arith.constant 0 : index
    %c0_16 = arith.constant 0 : index
    %22 = vector.load %arg2[%c0_14, %c0_15, %c0_16] : memref<1x36x512xf32, #tpu.memory_space<vmem>>, vector<1x36x512xf32>
    %23 = vector.shape_cast %22 : vector<1x36x512xf32> to vector<36x512xf32>
    %24 = arith.mulf %23, %21 : vector<36x512xf32>
    %25 = arith.truncf %24 : vector<36x512xf32> to vector<36x512xbf16>
    %c0_17 = arith.constant 0 : index
    %c0_18 = arith.constant 0 : index
    %26 = vector.load %arg7[%c0_17, %c0_18] : memref<512x128xbf16, #tpu.memory_space<vmem>>, vector<512x128xbf16>
    %cst_19 = arith.constant dense<0.000000e+00> : vector<36x128xf32>
    %27 = tpu.matmul %25, %26, %cst_19 {dimension_numbers = #tpu.dot_dimension_numbers<[1], [0], [0], [1], [0, 0, 1, 1], [], []>} : vector<36x512xbf16>, vector<512x128xbf16>, vector<36x128xf32> -> vector<36x128xf32>
    %c0_20 = arith.constant 0 : index
    %c0_21 = arith.constant 0 : index
    %28 = vector.load %arg8[%c0_20, %c0_21] : memref<1x128xf32, #tpu.memory_space<vmem>>, vector<1x128xf32>
    %29 = vector.broadcast %28 : vector<1x128xf32> to vector<36x128xf32>
    %30 = arith.addf %27, %29 : vector<36x128xf32>
    %cst_22 = arith.constant 0.000000e+00 : f32
    %31 = vector.broadcast %cst_22 : f32 to vector<36x128xf32>
    %32 = arith.maximumf %30, %31 : vector<36x128xf32>
    %c0_23 = arith.constant 0 : index
    %c0_24 = arith.constant 0 : index
    %33 = vector.load %arg10[%c0_23, %c0_24] : memref<1x256xf32, #tpu.memory_space<vmem>>, vector<1x256xf32>
    %34 = vector.shape_cast %33 : vector<1x256xf32> to vector<1x256xf32>
    %35 = vector.broadcast %34 : vector<1x256xf32> to vector<4x256xf32>
    %36 = vector.extract_strided_slice %32 {offsets = [0, 0], sizes = [4, 128], strides = [1, 1]} : vector<36x128xf32> to vector<4x128xf32>
    %37 = arith.truncf %36 : vector<4x128xf32> to vector<4x128xbf16>
    %c0_25 = arith.constant 0 : index
    %c0_26 = arith.constant 0 : index
    %c0_27 = arith.constant 0 : index
    %38 = vector.load %arg9[%c0_25, %c0_26, %c0_27] : memref<9x128x256xbf16, #tpu.memory_space<vmem>>, vector<1x128x256xbf16>
    %39 = vector.shape_cast %38 : vector<1x128x256xbf16> to vector<128x256xbf16>
    %cst_28 = arith.constant dense<0.000000e+00> : vector<4x256xf32>
    %40 = tpu.matmul %37, %39, %cst_28 {dimension_numbers = #tpu.dot_dimension_numbers<[1], [0], [0], [1], [0, 0, 1, 1], [], []>} : vector<4x128xbf16>, vector<128x256xbf16>, vector<4x256xf32> -> vector<4x256xf32>
    %41 = arith.addf %35, %40 : vector<4x256xf32>
    %42 = vector.extract_strided_slice %32 {offsets = [4, 0], sizes = [4, 128], strides = [1, 1]} : vector<36x128xf32> to vector<4x128xf32>
    %43 = arith.truncf %42 : vector<4x128xf32> to vector<4x128xbf16>
    %c1 = arith.constant 1 : index
    %c0_29 = arith.constant 0 : index
    %c0_30 = arith.constant 0 : index
    %44 = vector.load %arg9[%c1, %c0_29, %c0_30] : memref<9x128x256xbf16, #tpu.memory_space<vmem>>, vector<1x128x256xbf16>
    %45 = vector.shape_cast %44 : vector<1x128x256xbf16> to vector<128x256xbf16>
    %cst_31 = arith.constant dense<0.000000e+00> : vector<4x256xf32>
    %46 = tpu.matmul %43, %45, %cst_31 {dimension_numbers = #tpu.dot_dimension_numbers<[1], [0], [0], [1], [0, 0, 1, 1], [], []>} : vector<4x128xbf16>, vector<128x256xbf16>, vector<4x256xf32> -> vector<4x256xf32>
    %47 = arith.addf %41, %46 : vector<4x256xf32>
    %48 = vector.extract_strided_slice %32 {offsets = [8, 0], sizes = [4, 128], strides = [1, 1]} : vector<36x128xf32> to vector<4x128xf32>
    %49 = arith.truncf %48 : vector<4x128xf32> to vector<4x128xbf16>
    %c2 = arith.constant 2 : index
    %c0_32 = arith.constant 0 : index
    %c0_33 = arith.constant 0 : index
    %50 = vector.load %arg9[%c2, %c0_32, %c0_33] : memref<9x128x256xbf16, #tpu.memory_space<vmem>>, vector<1x128x256xbf16>
    %51 = vector.shape_cast %50 : vector<1x128x256xbf16> to vector<128x256xbf16>
    %cst_34 = arith.constant dense<0.000000e+00> : vector<4x256xf32>
    %52 = tpu.matmul %49, %51, %cst_34 {dimension_numbers = #tpu.dot_dimension_numbers<[1], [0], [0], [1], [0, 0, 1, 1], [], []>} : vector<4x128xbf16>, vector<128x256xbf16>, vector<4x256xf32> -> vector<4x256xf32>
    %53 = arith.addf %47, %52 : vector<4x256xf32>
    %54 = vector.extract_strided_slice %32 {offsets = [12, 0], sizes = [4, 128], strides = [1, 1]} : vector<36x128xf32> to vector<4x128xf32>
    %55 = arith.truncf %54 : vector<4x128xf32> to vector<4x128xbf16>
    %c3 = arith.constant 3 : index
    %c0_35 = arith.constant 0 : index
    %c0_36 = arith.constant 0 : index
    %56 = vector.load %arg9[%c3, %c0_35, %c0_36] : memref<9x128x256xbf16, #tpu.memory_space<vmem>>, vector<1x128x256xbf16>
    %57 = vector.shape_cast %56 : vector<1x128x256xbf16> to vector<128x256xbf16>
    %cst_37 = arith.constant dense<0.000000e+00> : vector<4x256xf32>
    %58 = tpu.matmul %55, %57, %cst_37 {dimension_numbers = #tpu.dot_dimension_numbers<[1], [0], [0], [1], [0, 0, 1, 1], [], []>} : vector<4x128xbf16>, vector<128x256xbf16>, vector<4x256xf32> -> vector<4x256xf32>
    %59 = arith.addf %53, %58 : vector<4x256xf32>
    %60 = vector.extract_strided_slice %32 {offsets = [16, 0], sizes = [4, 128], strides = [1, 1]} : vector<36x128xf32> to vector<4x128xf32>
    %61 = arith.truncf %60 : vector<4x128xf32> to vector<4x128xbf16>
    %c4 = arith.constant 4 : index
    %c0_38 = arith.constant 0 : index
    %c0_39 = arith.constant 0 : index
    %62 = vector.load %arg9[%c4, %c0_38, %c0_39] : memref<9x128x256xbf16, #tpu.memory_space<vmem>>, vector<1x128x256xbf16>
    %63 = vector.shape_cast %62 : vector<1x128x256xbf16> to vector<128x256xbf16>
    %cst_40 = arith.constant dense<0.000000e+00> : vector<4x256xf32>
    %64 = tpu.matmul %61, %63, %cst_40 {dimension_numbers = #tpu.dot_dimension_numbers<[1], [0], [0], [1], [0, 0, 1, 1], [], []>} : vector<4x128xbf16>, vector<128x256xbf16>, vector<4x256xf32> -> vector<4x256xf32>
    %65 = arith.addf %59, %64 : vector<4x256xf32>
    %66 = vector.extract_strided_slice %32 {offsets = [20, 0], sizes = [4, 128], strides = [1, 1]} : vector<36x128xf32> to vector<4x128xf32>
    %67 = arith.truncf %66 : vector<4x128xf32> to vector<4x128xbf16>
    %c5 = arith.constant 5 : index
    %c0_41 = arith.constant 0 : index
    %c0_42 = arith.constant 0 : index
    %68 = vector.load %arg9[%c5, %c0_41, %c0_42] : memref<9x128x256xbf16, #tpu.memory_space<vmem>>, vector<1x128x256xbf16>
    %69 = vector.shape_cast %68 : vector<1x128x256xbf16> to vector<128x256xbf16>
    %cst_43 = arith.constant dense<0.000000e+00> : vector<4x256xf32>
    %70 = tpu.matmul %67, %69, %cst_43 {dimension_numbers = #tpu.dot_dimension_numbers<[1], [0], [0], [1], [0, 0, 1, 1], [], []>} : vector<4x128xbf16>, vector<128x256xbf16>, vector<4x256xf32> -> vector<4x256xf32>
    %71 = arith.addf %65, %70 : vector<4x256xf32>
    %72 = vector.extract_strided_slice %32 {offsets = [24, 0], sizes = [4, 128], strides = [1, 1]} : vector<36x128xf32> to vector<4x128xf32>
    %73 = arith.truncf %72 : vector<4x128xf32> to vector<4x128xbf16>
    %c6 = arith.constant 6 : index
    %c0_44 = arith.constant 0 : index
    %c0_45 = arith.constant 0 : index
    %74 = vector.load %arg9[%c6, %c0_44, %c0_45] : memref<9x128x256xbf16, #tpu.memory_space<vmem>>, vector<1x128x256xbf16>
    %75 = vector.shape_cast %74 : vector<1x128x256xbf16> to vector<128x256xbf16>
    %cst_46 = arith.constant dense<0.000000e+00> : vector<4x256xf32>
    %76 = tpu.matmul %73, %75, %cst_46 {dimension_numbers = #tpu.dot_dimension_numbers<[1], [0], [0], [1], [0, 0, 1, 1], [], []>} : vector<4x128xbf16>, vector<128x256xbf16>, vector<4x256xf32> -> vector<4x256xf32>
    %77 = arith.addf %71, %76 : vector<4x256xf32>
    %78 = vector.extract_strided_slice %32 {offsets = [28, 0], sizes = [4, 128], strides = [1, 1]} : vector<36x128xf32> to vector<4x128xf32>
    %79 = arith.truncf %78 : vector<4x128xf32> to vector<4x128xbf16>
    %c7 = arith.constant 7 : index
    %c0_47 = arith.constant 0 : index
    %c0_48 = arith.constant 0 : index
    %80 = vector.load %arg9[%c7, %c0_47, %c0_48] : memref<9x128x256xbf16, #tpu.memory_space<vmem>>, vector<1x128x256xbf16>
    %81 = vector.shape_cast %80 : vector<1x128x256xbf16> to vector<128x256xbf16>
    %cst_49 = arith.constant dense<0.000000e+00> : vector<4x256xf32>
    %82 = tpu.matmul %79, %81, %cst_49 {dimension_numbers = #tpu.dot_dimension_numbers<[1], [0], [0], [1], [0, 0, 1, 1], [], []>} : vector<4x128xbf16>, vector<128x256xbf16>, vector<4x256xf32> -> vector<4x256xf32>
    %83 = arith.addf %77, %82 : vector<4x256xf32>
    %84 = vector.extract_strided_slice %32 {offsets = [32, 0], sizes = [4, 128], strides = [1, 1]} : vector<36x128xf32> to vector<4x128xf32>
    %85 = arith.truncf %84 : vector<4x128xf32> to vector<4x128xbf16>
    %c8 = arith.constant 8 : index
    %c0_50 = arith.constant 0 : index
    %c0_51 = arith.constant 0 : index
    %86 = vector.load %arg9[%c8, %c0_50, %c0_51] : memref<9x128x256xbf16, #tpu.memory_space<vmem>>, vector<1x128x256xbf16>
    %87 = vector.shape_cast %86 : vector<1x128x256xbf16> to vector<128x256xbf16>
    %cst_52 = arith.constant dense<0.000000e+00> : vector<4x256xf32>
    %88 = tpu.matmul %85, %87, %cst_52 {dimension_numbers = #tpu.dot_dimension_numbers<[1], [0], [0], [1], [0, 0, 1, 1], [], []>} : vector<4x128xbf16>, vector<128x256xbf16>, vector<4x256xf32> -> vector<4x256xf32>
    %89 = arith.addf %83, %88 : vector<4x256xf32>
    %cst_53 = arith.constant 0.000000e+00 : f32
    %90 = vector.broadcast %cst_53 : f32 to vector<4x256xf32>
    %91 = arith.maximumf %89, %90 : vector<4x256xf32>
    %c0_54 = arith.constant 0 : index
    %c0_55 = arith.constant 0 : index
    %c0_56 = arith.constant 0 : index
    %92 = vector.load %arg11[%c0_54, %c0_55, %c0_56] : memref<1x4x256xf32, #tpu.memory_space<vmem>>, vector<1x4x256xf32>
    %93 = vector.shape_cast %92 : vector<1x4x256xf32> to vector<4x256xf32>
    %94 = vector.shape_cast %91 : vector<4x256xf32> to vector<1x4x256xf32>
    tpu.vector_store %arg11[%c0_54, %c0_55, %c0_56], %94 {strides = array<i32>} : memref<1x4x256xf32, #tpu.memory_space<vmem>>, vector<1x4x256xf32>,
    return
  }
  func.func @transform_0(%arg0: i32) -> (i32, i32, i32) {
    %c0_i32 = arith.constant 0 : i32
    %c0_i32_0 = arith.constant 0 : i32
    %c0_i32_1 = arith.constant 0 : i32
    return %arg0, %c0_i32, %c0_i32_0 : i32, i32, i32
  }
  func.func @transform_1(%arg0: i32) -> (i32, i32, i32) {
    %c0_i32 = arith.constant 0 : i32
    %c0_i32_0 = arith.constant 0 : i32
    %c0_i32_1 = arith.constant 0 : i32
    return %arg0, %c0_i32, %c0_i32_0 : i32, i32, i32
  }
  func.func @transform_2(%arg0: i32) -> (i32, i32) {
    %c0_i32 = arith.constant 0 : i32
    %c0_i32_0 = arith.constant 0 : i32
    %c0_i32_1 = arith.constant 0 : i32
    return %c0_i32, %c0_i32_0 : i32, i32
  }
  func.func @transform_3(%arg0: i32) -> (i32, i32) {
    %c0_i32 = arith.constant 0 : i32
    %c0_i32_0 = arith.constant 0 : i32
    %c0_i32_1 = arith.constant 0 : i32
    return %c0_i32, %c0_i32_0 : i32, i32
  }
  func.func @transform_4(%arg0: i32) -> (i32, i32) {
    %c0_i32 = arith.constant 0 : i32
    %c0_i32_0 = arith.constant 0 : i32
    %c0_i32_1 = arith.constant 0 : i32
    return %c0_i32, %c0_i32_0 : i32, i32
  }
  func.func @transform_5(%arg0: i32) -> (i32, i32) {
    %c0_i32 = arith.constant 0 : i32
    %c0_i32_0 = arith.constant 0 : i32
    %c0_i32_1 = arith.constant 0 : i32
    return %c0_i32, %c0_i32_0 : i32, i32
  }
  func.func @transform_6(%arg0: i32) -> (i32, i32) {
    %c0_i32 = arith.constant 0 : i32
    %c0_i32_0 = arith.constant 0 : i32
    %c0_i32_1 = arith.constant 0 : i32
    return %c0_i32, %c0_i32_0 : i32, i32
  }
  func.func @transform_7(%arg0: i32) -> (i32, i32) {
    %c0_i32 = arith.constant 0 : i32
    %c0_i32_0 = arith.constant 0 : i32
    %c0_i32_1 = arith.constant 0 : i32
    return %c0_i32, %c0_i32_0 : i32, i32
  }
  func.func @transform_8(%arg0: i32) -> (i32, i32, i32) {
    %c0_i32 = arith.constant 0 : i32
    %c0_i32_0 = arith.constant 0 : i32
    %c0_i32_1 = arith.constant 0 : i32
    %c0_i32_2 = arith.constant 0 : i32
    return %c0_i32, %c0_i32_0, %c0_i32_1 : i32, i32, i32
  }
  func.func @transform_9(%arg0: i32) -> (i32, i32) {
    %c0_i32 = arith.constant 0 : i32
    %c0_i32_0 = arith.constant 0 : i32
    %c0_i32_1 = arith.constant 0 : i32
    return %c0_i32, %c0_i32_0 : i32, i32
  }
  func.func @transform_10(%arg0: i32) -> (i32, i32, i32) {
    %c0_i32 = arith.constant 0 : i32
    %c0_i32_0 = arith.constant 0 : i32
    %c0_i32_1 = arith.constant 0 : i32
    return %arg0, %c0_i32, %c0_i32_0 : i32, i32, i32
  }
}

</mosaic_0001>

<bundles_post_ra>
// kernel: look_module_forward.1
= control target key start
LH: loop header
LB: loop body
LE: loop exit
PB: predicated region body
PF: predicated region fallthrough
CT: control target
= control target key end

     0   :  { %15 = vsyncpa [#allocation3], 0  ;;  %s5075_s0 = inlined_call_operand.vmem [shape: bf16[2,4,256], index: 0, kind: input, shape index: {}]   ;;  %s5076_s1 = inlined_call_operand.vmem [shape: f32[2,36,512], index: 1, kind: input, shape index: {}]   ;;  %s5077_s2 = inlined_call_operand.vmem [shape: bf16[256,256], index: 2, kind: input, shape index: {}]   ;;  %s5078_s3 = inlined_call_operand.vmem [shape: f32[1,256], index: 3, kind: input, shape index: {}]   ;;  %s5079_s4 = inlined_call_operand.vmem [shape: bf16[256,512], index: 4, kind: input, shape index: {}]   ;;  %s5080_s5 = inlined_call_operand.vmem [shape: f32[1,512], index: 5, kind: input, shape index: {}]   ;;  %s5081_s6 = inlined_call_operand.vmem [shape: bf16[512,128], index: 6, kind: input, shape index: {}]   ;;  %s5082_s7 = inlined_call_operand.vmem [shape: f32[1,128], index: 7, kind: input, shape index: {}]   ;;  %s5083_s8 = inlined_call_operand.vmem [shape: bf16[9,128,256], index: 8, kind: input, shape index: {}]   ;;  %s5084_s9 = inlined_call_operand.vmem [shape: f32[1,256], index: 9, kind: input, shape index: {}]   ;;  %s5085_s10 = inlined_call_operand.hbm [shape: f32[2,4,256], index: 10, kind: output, shape index: {}]  }
   0x1   :  { %17 = vsyncpa [#allocation3 + $0x1], 0  ;;  %s4067_s13 = smov 0   ;;  %s4069_s14 = smov 0  }
   0x2   :  { %s4071_s15 = smov 0   ;;  %s4073_s16 = smov 0  }
   0x3 LB: > { %5087 = sst [smem:[#allocation5_spill]] %s4004_s15  ;;  %s4088_s17 = sadd.s32 4294967295, %s4008_s16   ;;  %s4008_s16 = sphi %s4073_s16, %s5095_s16   ;;  %s4004_s15 = sphi %s4071_s15, %s5092_s15   ;;  %s4000_s14 = sphi %s4069_s14, %s5094_s14   ;;  %s3996_s13 = sphi %s4067_s13, %s5093_s13  }
   0x4   : > { %s2978_s18 = sadd.s32 4294967294, %s4008_s16   ;;  %s4092_s19 = sadd.s32 1, %s4008_s16  }
   0x5   : > { %s250_s20 = sadd.s32 1, %s4004_s15  ;;  %s247_s21 = ssub.s32 %s4008_s16, %s4092_s19 }
   0x6   : > { %p260_p0 = scmp.ne.s32.totalorder %s4004_s15, %s4000_s14  ;;  %p248_p1 = scmp.eq.s32.totalorder %s247_s21, 0 }
   0x7   : > { %p261_p2 = scmp.eq.s32.totalorder %s4088_s17, 1  ;;  %p266_p3 = scmp.ne.s32.totalorder %s4000_s14, %s3996_s13 }
   0x8   : > { %p267_p4 = scmp.eq.s32.totalorder %s2978_s18, 1  ;;  %p2981_p7 = scmp.ge.s32.totalorder %s4008_s16, 1 }
   0x9   : > { %s4103_s22 = scalar_select %p248_p1, %s4004_s15, %s250_s20  }
   0xa   : > { %p4105_p5 = por %p261_p2, %p260_p0  ;;  %p4109_p6 = por %p267_p4, %p266_p3 }
   0xb   : > { %5088 = sst [smem:[#allocation6_spill]] %s4103_s22  ;;  %p325_p8 = scmp.lt.s32.totalorder %s4008_s16, 3 }
   0xd   : > { %p326_p9 = pnand %p2981_p7, %p325_p8 }
   0xe   : > { %v3538_v0 = vld [vmem:[%s5077_s2 + $0x4] ss:$8 sps:$4 sm:$0xff] (!%p326_p9)   ;;  %v3540_v1 = vld [vmem:[%s5077_s2] ss:$8 sps:$4 sm:$0xff] (!%p326_p9)   ;;  %v3541_v2 = vld [vmem:[%s5077_s2 + $0x14] ss:$8 sps:$4 sm:$0xff] (!%p326_p9)  }
   0xf   : > { %329 = sbr.rel (%p326_p9) target bundleno = 1324 (0x52c), region = 60  ;;  %595 = vmatprep.subr.bf16.mxu1 (!%p326_p9), %v3538_v0  ;;  %v3543_v3 = vld [vmem:[%s5077_s2 + $0x10] ss:$8 sps:$4 sm:$0xff] (!%p326_p9)   ;;  %v3544_v4 = vld [vmem:[%s5077_s2 + $0x24] ss:$8 sps:$4 sm:$0xff] (!%p326_p9)   ;;  %p368_p10 = scmp.lt.s32.totalorder (!%p326_p9), %s4088_s17, 1 }
  0x10   : > { %596 = vmatpush1.bf16.msra.mxu1 (!%p326_p9), %v3540_v1  ;;  %v3546_v5 = vld [vmem:[%s5077_s2 + $0x20] ss:$8 sps:$4 sm:$0xff] (!%p326_p9)   ;;  %v3547_v6 = vld [vmem:[%s5077_s2 + $0x34] ss:$8 sps:$4 sm:$0xff] (!%p326_p9)   ;;  %v3549_v7 = vld [vmem:[%s5077_s2 + $0x30] ss:$8 sps:$4 sm:$0xff] (!%p326_p9)  }
  0x11   : > { %597 = vmatprep.subr.bf16.mxu1 (!%p326_p9), %v3541_v2  ;;  %v3550_v8 = vld [vmem:[%s5077_s2 + $0x44] ss:$8 sps:$4 sm:$0xff] (!%p326_p9)   ;;  %v3552_v9 = vld [vmem:[%s5077_s2 + $0x40] ss:$8 sps:$4 sm:$0xff] (!%p326_p9)   ;;  %v3553_v10 = vld [vmem:[%s5077_s2 + $0x54] ss:$8 sps:$4 sm:$0xff] (!%p326_p9)  }
  0x12   : > { %v3555_v11 = vld [vmem:[%s5077_s2 + $0x50] ss:$8 sps:$4 sm:$0xff] (!%p326_p9)   ;;  %v3556_v12 = vld [vmem:[%s5077_s2 + $0x64] ss:$8 sps:$4 sm:$0xff] (!%p326_p9)   ;;  %v3558_v15 = vld [vmem:[%s5077_s2 + $0x60] ss:$8 sps:$4 sm:$0xff] (!%p326_p9)  }
  0x13   : > { %v3559_v16 = vld [vmem:[%s5077_s2 + $0x74] ss:$8 sps:$4 sm:$0xff] (!%p326_p9)   ;;  %v3561_v17 = vld [vmem:[%s5077_s2 + $0x70] ss:$8 sps:$4 sm:$0xff] (!%p326_p9)   ;;  %v3562_v18 = vld [vmem:[%s5077_s2 + $0x84] ss:$8 sps:$4 sm:$0xff] (!%p326_p9)  }
  0x14   : > { %598 = vmatpush1.bf16.msra.mxu1 (!%p326_p9), %v3543_v3  ;;  %v3564_v19 = vld [vmem:[%s5077_s2 + $0x80] ss:$8 sps:$4 sm:$0xff] (!%p326_p9)   ;;  %v3565_v20 = vld [vmem:[%s5077_s2 + $0x94] ss:$8 sps:$4 sm:$0xff] (!%p326_p9)   ;;  %v3567_v21 = vld [vmem:[%s5077_s2 + $0x90] ss:$8 sps:$4 sm:$0xff] (!%p326_p9)   ;;  %v414_v3 = vlaneseq (!%p326_p9) }
  0x15   : > { %599 = vmatprep.subr.bf16.mxu1 (!%p326_p9), %v3544_v4  ;;  %v3568_v22 = vld [vmem:[%s5077_s2 + $0xa4] ss:$8 sps:$4 sm:$0xff] (!%p326_p9)   ;;  %v3570_v23 = vld [vmem:[%s5077_s2 + $0xa0] ss:$8 sps:$4 sm:$0xff] (!%p326_p9)   ;;  %v3571_v24 = vld [vmem:[%s5077_s2 + $0xb4] ss:$8 sps:$4 sm:$0xff] (!%p326_p9)  }
  0x16   : > { %s4141_s30 = scalar_select %p368_p10, %s4088_s17, 1  ;;  %v3573_v25 = vld [vmem:[%s5077_s2 + $0xb0] ss:$8 sps:$4 sm:$0xff]   ;;  %v3574_v26 = vld [vmem:[%s5077_s2 + $0xc4] ss:$8 sps:$4 sm:$0xff]   ;;  %v4318_v4 = vshrl.u32 %v414_v3, 7 }
  0x17   : > { %v3576_v27 = vld [vmem:[%s5077_s2 + $0xc0] ss:$8 sps:$4 sm:$0xff]   ;;  %v3577_v28 = vld [vmem:[%s5077_s2 + $0xd4] ss:$8 sps:$4 sm:$0xff]   ;;  %v3579_v29 = vld [vmem:[%s5077_s2 + $0xd0] ss:$8 sps:$4 sm:$0xff]  }
  0x18   : > { %600 = vmatpush1.bf16.msra.mxu1 %v3546_v5  ;;  %s3393_s21 = sshll.u32 %s4141_s30, 2  ;;  %v3580_v30 = vld [vmem:[%s5077_s2 + $0xe4] ss:$8 sps:$4 sm:$0xff]   ;;  %v3582_v31 = vld [vmem:[%s5077_s2 + $0xe0] ss:$8 sps:$4 sm:$0xff]   ;;  %v4321_v5 = vsub.s32 0, %v4318_v4 }
  0x19   : > { %601 = vmatprep.subr.bf16.mxu1 %v3547_v6  ;;  %s372_s29 = scalar_lea.vmem %s5075_s0, %s3393_s21  ;;  %v3583_v32 = vld [vmem:[%s5077_s2 + $0xf4] ss:$8 sps:$4 sm:$0xff]   ;;  %v3585_v33 = vld [vmem:[%s5077_s2 + $0xf0] ss:$8 sps:$4 sm:$0xff]   ;;  %v412_v6 = vld [vmem:[%s5078_s3] sm:$0x3] }
  0x1a   : > { %v2986_v13 = vld.sshfl [vmem:[%s372_s29] sm:$0x33 pattern:$0x76325410]  ;;  %v3588_v34 = vld [vmem:[%s5079_s4 + $0x4] ss:$16 sps:$4 sm:$0xff]  }
  0x1b   : > { %v432_v14 = vcombine.high %v2986_v13, %v2986_v13  ;;  %v3586_v35 = vld [vmem:[%s5079_s4] ss:$16 sps:$4 sm:$0xff]   ;;  %v3591_v36 = vld [vmem:[%s5079_s4 + $0x24] ss:$16 sps:$4 sm:$0xff]   ;;  %v3636_v2 = vld [vmem:[%s5079_s4 + $0xc] ss:$16 sps:$4 sm:$0xff]  }
  0x1c   : > { %602 = vmatpush1.bf16.msra.mxu1 %v3549_v7  ;;  %v3589_v37 = vld [vmem:[%s5079_s4 + $0x20] ss:$16 sps:$4 sm:$0xff]   ;;  %v3594_v38 = vld [vmem:[%s5079_s4 + $0x44] ss:$16 sps:$4 sm:$0xff]   ;;  %v4327_v7 = vsub.s32 1, %v4318_v4  ;;  %s3497_s18 = smul.u32 160, %s4141_s30 }
  0x1d   : > { %603 = vmatprep.subr.bf16.mxu1 %v3550_v8  ;;  %627 = vmatprep.mubr.bf16.mxu1 %v432_v14  ;;  %v3592_v39 = vld [vmem:[%s5079_s4 + $0x40] ss:$16 sps:$4 sm:$0xff]   ;;  %v3597_v40 = vld [vmem:[%s5079_s4 + $0x64] ss:$16 sps:$4 sm:$0xff]   ;;  %v417_v8 = vrot.slane %v412_v6, %v4321_v5  ;;  %vm1160_vm0 = vcmask 1043456   ;;  %s3394_s15 = sshll.u32 %s4088_s17, 7 }
  0x1e   : > { %v3595_v41 = vld [vmem:[%s5079_s4 + $0x60] ss:$16 sps:$4 sm:$0xff]   ;;  %v3600_v42 = vld [vmem:[%s5079_s4 + $0x84] ss:$16 sps:$4 sm:$0xff]   ;;  %s4492_s21 = scalar_lea.vmem %s5076_s1, %s3497_s18  ;;  %s5033_s29 = scalar_lea.hbm %s5085_s10, %s3394_s15 }
  0x1f   : > { %v3598_v43 = vld [vmem:[%s5079_s4 + $0x80] ss:$16 sps:$4 sm:$0xff]   ;;  %v3603_v44 = vld [vmem:[%s5079_s4 + $0xa4] ss:$16 sps:$4 sm:$0xff]   ;;  %s4011_s17 = smov [#allocation2]  }
  0x20   : > { %604 = vmatpush1.bf16.msra.mxu1 %v3552_v9  ;;  %v3601_v45 = vld [vmem:[%s5079_s4 + $0xa0] ss:$16 sps:$4 sm:$0xff]   ;;  %v3606_v46 = vld [vmem:[%s5079_s4 + $0xc4] ss:$16 sps:$4 sm:$0xff]   ;;  %v421_v9 = vrot.slane %v412_v6, %v4327_v7  ;;  %s3950_s18 = sshll.u32 %s4011_s17, 4  ;;  %s3951_s18 = int_to_ptr.vmem [resolvable:$false] %s3950_s18 }
  0x21   : > { %605 = vmatprep.subr.bf16.mxu1 %v3553_v10  ;;  %v3604_v47 = vld [vmem:[%s5079_s4 + $0xc0] ss:$16 sps:$4 sm:$0xff]   ;;  %v3609_v48 = vld [vmem:[%s5079_s4 + $0xe4] ss:$16 sps:$4 sm:$0xff]   ;;  %s3952_s20 = scalar_lea.vmem %s3951_s18, 256 }
  0x22   : > { %v3607_v49 = vld [vmem:[%s5079_s4 + $0xe0] ss:$16 sps:$4 sm:$0xff]   ;;  %v3612_v50 = vld [vmem:[%s5079_s4 + $0x104] ss:$16 sps:$4 sm:$0xff]  }
  0x23   : > { %v3610_v51 = vld [vmem:[%s5079_s4 + $0x100] ss:$16 sps:$4 sm:$0xff]   ;;  %v3615_v52 = vld [vmem:[%s5079_s4 + $0x124] ss:$16 sps:$4 sm:$0xff]  }
  0x24   : > { %606 = vmatpush1.bf16.msra.mxu1 %v3555_v11  ;;  %v3613_v53 = vld [vmem:[%s5079_s4 + $0x120] ss:$16 sps:$4 sm:$0xff]   ;;  %v3618_v54 = vld [vmem:[%s5079_s4 + $0x144] ss:$16 sps:$4 sm:$0xff]  }
  0x25   : > { %607 = vmatprep.subr.bf16.mxu1 %v3556_v12  ;;  %v3616_v55 = vld [vmem:[%s5079_s4 + $0x140] ss:$16 sps:$4 sm:$0xff]   ;;  %v3621_v56 = vld [vmem:[%s5079_s4 + $0x164] ss:$16 sps:$4 sm:$0xff]  }
  0x26   : > { %v3619_v57 = vld [vmem:[%s5079_s4 + $0x160] ss:$16 sps:$4 sm:$0xff]   ;;  %v3624_v58 = vld [vmem:[%s5079_s4 + $0x184] ss:$16 sps:$4 sm:$0xff]  }
  0x27   : > { %v3622_v59 = vld [vmem:[%s5079_s4 + $0x180] ss:$16 sps:$4 sm:$0xff]   ;;  %v3627_v60 = vld [vmem:[%s5079_s4 + $0x1a4] ss:$16 sps:$4 sm:$0xff]  }
  0x28   : > { %608 = vmatpush1.bf16.msra.mxu1 %v3558_v15  ;;  %v3625_v61 = vld [vmem:[%s5079_s4 + $0x1a0] ss:$16 sps:$4 sm:$0xff]   ;;  %v3630_v62 = vld [vmem:[%s5079_s4 + $0x1c4] ss:$16 sps:$4 sm:$0xff]  }
  0x29   : > { %609 = vmatprep.subr.bf16.mxu1 %v3559_v16  ;;  %v3628_v63 = vld [vmem:[%s5079_s4 + $0x1c0] ss:$16 sps:$4 sm:$0xff]   ;;  %v3633_v0 = vld [vmem:[%s5079_s4 + $0x1e4] ss:$16 sps:$4 sm:$0xff]  }
  0x2a   : > { %v3631_v1 = vld [vmem:[%s5079_s4 + $0x1e0] ss:$16 sps:$4 sm:$0xff]  }
  0x2b   : > { %v3698_v3 = vld [vmem:[%s5081_s6 + $0xc0] sm:$0xff]  }
  0x2c   : > { %610 = vmatpush1.bf16.msra.mxu1 %v3561_v17  ;;  %v4482_v6 = vld [vmem:[%s5080_s5] sm:$0xf] }
  0x2d   : > { %611 = vmatprep.subr.bf16.mxu1 %v3562_v18 }
  0x30   : > { %612 = vmatpush1.bf16.msra.mxu1 %v3564_v19  ;;  %v3634_v19 = vld [vmem:[%s5079_s4 + $0x8] ss:$16 sps:$4 sm:$0xff]  }
  0x31   : > { %613 = vmatprep.subr.bf16.mxu1 %v3565_v20 }
  0x34   : > { %614 = vmatpush1.bf16.msra.mxu1 %v3567_v21  ;;  %v3639_v21 = vld [vmem:[%s5079_s4 + $0x2c] ss:$16 sps:$4 sm:$0xff]  }
  0x35   : > { %615 = vmatprep.subr.bf16.mxu1 %v3568_v22  ;;  %v3637_v22 = vld [vmem:[%s5079_s4 + $0x28] ss:$16 sps:$4 sm:$0xff]  }
  0x38   : > { %616 = vmatpush1.bf16.msra.mxu1 %v3570_v23  ;;  %v3642_v23 = vld [vmem:[%s5079_s4 + $0x4c] ss:$16 sps:$4 sm:$0xff]  }
  0x39   : > { %617 = vmatprep.subr.bf16.mxu1 %v3571_v24  ;;  %v3640_v24 = vld [vmem:[%s5079_s4 + $0x48] ss:$16 sps:$4 sm:$0xff]  }
  0x3c   : > { %618 = vmatpush1.bf16.msra.mxu1 %v3573_v25  ;;  %v3645_v25 = vld [vmem:[%s5079_s4 + $0x6c] ss:$16 sps:$4 sm:$0xff]  }
  0x3d   : > { %619 = vmatprep.subr.bf16.mxu1 %v3574_v26  ;;  %v3643_v26 = vld [vmem:[%s5079_s4 + $0x68] ss:$16 sps:$4 sm:$0xff]  }
  0x40   : > { %620 = vmatpush1.bf16.msra.mxu1 %v3576_v27  ;;  %v3648_v27 = vld [vmem:[%s5079_s4 + $0x8c] ss:$16 sps:$4 sm:$0xff]  }
  0x41   : > { %621 = vmatprep.subr.bf16.mxu1 %v3577_v28  ;;  %v3646_v28 = vld [vmem:[%s5079_s4 + $0x88] ss:$16 sps:$4 sm:$0xff]  }
  0x44   : > { %622 = vmatpush1.bf16.msra.mxu1 %v3579_v29  ;;  %v3651_v29 = vld [vmem:[%s5079_s4 + $0xac] ss:$16 sps:$4 sm:$0xff]  }
  0x45   : > { %623 = vmatprep.subr.bf16.mxu1 %v3580_v30  ;;  %v3649_v30 = vld [vmem:[%s5079_s4 + $0xa8] ss:$16 sps:$4 sm:$0xff]  }
  0x48   : > { %624 = vmatpush1.bf16.msra.mxu1 %v3582_v31  ;;  %v3654_v31 = vld [vmem:[%s5079_s4 + $0xcc] ss:$16 sps:$4 sm:$0xff]  }
  0x49   : > { %625 = vmatprep.subr.bf16.mxu1 %v3583_v32  ;;  %v3652_v32 = vld [vmem:[%s5079_s4 + $0xc8] ss:$16 sps:$4 sm:$0xff]  }
  0x4c   : > { %626 = vmatpush1.bf16.msra.mxu1 %v3585_v33  ;;  %v3657_v33 = vld [vmem:[%s5079_s4 + $0xec] ss:$16 sps:$4 sm:$0xff]  }
  0x4d   : > { %1046 = vmatprep.subr.bf16.mxu1 %v3588_v34  ;;  %v3655_v34 = vld [vmem:[%s5079_s4 + $0xe8] ss:$16 sps:$4 sm:$0xff]  }
  0x4f   : > { %628 = vmatmul.mubr.bf16.vlgmr.msra.gmra.mrb[0].mxu1 %v2986_v13 }
  0x50   : > { %1047 = vmatpush1.bf16.msra.mxu1 %v3586_v35  ;;  %v3660_v35 = vld [vmem:[%s5079_s4 + $0x10c] ss:$16 sps:$4 sm:$0xff]  }
  0x51   : > { %1048 = vmatprep.subr.bf16.mxu1 %v3591_v36  ;;  %v3658_v36 = vld [vmem:[%s5079_s4 + $0x108] ss:$16 sps:$4 sm:$0xff]  }
  0x54   : > { %1049 = vmatpush1.bf16.msra.mxu1 %v3589_v37  ;;  %v3663_v37 = vld [vmem:[%s5079_s4 + $0x12c] ss:$16 sps:$4 sm:$0xff]  }
  0x55   : > { %1050 = vmatprep.subr.bf16.mxu1 %v3594_v38  ;;  %v3661_v38 = vld [vmem:[%s5079_s4 + $0x128] ss:$16 sps:$4 sm:$0xff]  }
  0x58   : > { %1051 = vmatpush1.bf16.msra.mxu1 %v3592_v39  ;;  %v3666_v39 = vld [vmem:[%s5079_s4 + $0x14c] ss:$16 sps:$4 sm:$0xff]  }
  0x59   : > { %1052 = vmatprep.subr.bf16.mxu1 %v3597_v40  ;;  %v3664_v40 = vld [vmem:[%s5079_s4 + $0x148] ss:$16 sps:$4 sm:$0xff]  }
  0x5c   : > { %1053 = vmatpush1.bf16.msra.mxu1 %v3595_v41  ;;  %v3669_v41 = vld [vmem:[%s5079_s4 + $0x16c] ss:$16 sps:$4 sm:$0xff]  }
  0x5d   : > { %1054 = vmatprep.subr.bf16.mxu1 %v3600_v42  ;;  %v3667_v42 = vld [vmem:[%s5079_s4 + $0x168] ss:$16 sps:$4 sm:$0xff]  }
  0x60   : > { %1055 = vmatpush1.bf16.msra.mxu1 %v3598_v43  ;;  %v3672_v43 = vld [vmem:[%s5079_s4 + $0x18c] ss:$16 sps:$4 sm:$0xff]  }
  0x61   : > { %1056 = vmatprep.subr.bf16.mxu1 %v3603_v44  ;;  %v3670_v44 = vld [vmem:[%s5079_s4 + $0x188] ss:$16 sps:$4 sm:$0xff]  }
  0x64   : > { %1057 = vmatpush1.bf16.msra.mxu1 %v3601_v45  ;;  %v3675_v45 = vld [vmem:[%s5079_s4 + $0x1ac] ss:$16 sps:$4 sm:$0xff]  }
  0x65   : > { %1058 = vmatprep.subr.bf16.mxu1 %v3606_v46  ;;  %v3673_v46 = vld [vmem:[%s5079_s4 + $0x1a8] ss:$16 sps:$4 sm:$0xff]  }
  0x68   : > { %1059 = vmatpush1.bf16.msra.mxu1 %v3604_v47  ;;  %v3678_v47 = vld [vmem:[%s5079_s4 + $0x1cc] ss:$16 sps:$4 sm:$0xff]  }
  0x69   : > { %1060 = vmatprep.subr.bf16.mxu1 %v3609_v48  ;;  %v3676_v48 = vld [vmem:[%s5079_s4 + $0x1c8] ss:$16 sps:$4 sm:$0xff]  }
  0x6c   : > { %1061 = vmatpush1.bf16.msra.mxu1 %v3607_v49  ;;  %v3681_v49 = vld [vmem:[%s5079_s4 + $0x1ec] ss:$16 sps:$4 sm:$0xff]  }
  0x6d   : > { %1062 = vmatprep.subr.bf16.mxu1 %v3612_v50  ;;  %v3679_v50 = vld [vmem:[%s5079_s4 + $0x1e8] ss:$16 sps:$4 sm:$0xff]  }
  0x70   : > { %1063 = vmatpush1.bf16.msra.mxu1 %v3610_v51  ;;  %v3682_v51 = vld [vmem:[%s5081_s6 + $0x40] sm:$0xff]  }
  0x71   : > { %1064 = vmatprep.subr.bf16.mxu1 %v3615_v52  ;;  %v3683_v52 = vld [vmem:[%s5081_s6] sm:$0xff]  }
  0x74   : > { %1065 = vmatpush1.bf16.msra.mxu1 %v3613_v53  ;;  %v3684_v53 = vld [vmem:[%s5081_s6 + $0x48] sm:$0xff]  }
  0x75   : > { %1066 = vmatprep.subr.bf16.mxu1 %v3618_v54  ;;  %v3685_v54 = vld [vmem:[%s5081_s6 + $0x8] sm:$0xff]  }
  0x78   : > { %1067 = vmatpush1.bf16.msra.mxu1 %v3616_v55  ;;  %v3686_v55 = vld [vmem:[%s5081_s6 + $0x50] sm:$0xff]  }
  0x79   : > { %1068 = vmatprep.subr.bf16.mxu1 %v3621_v56  ;;  %v3687_v56 = vld [vmem:[%s5081_s6 + $0x10] sm:$0xff]  }
  0x7c   : > { %1069 = vmatpush1.bf16.msra.mxu1 %v3619_v57  ;;  %v3688_v57 = vld [vmem:[%s5081_s6 + $0x58] sm:$0xff]  }
  0x7d   : > { %1070 = vmatprep.subr.bf16.mxu1 %v3624_v58  ;;  %v3689_v58 = vld [vmem:[%s5081_s6 + $0x18] sm:$0xff]  }
  0x80   : > { %1071 = vmatpush1.bf16.msra.mxu1 %v3622_v59  ;;  %v3690_v59 = vld [vmem:[%s5081_s6 + $0x60] sm:$0xff]  }
  0x81   : > { %1072 = vmatprep.subr.bf16.mxu1 %v3627_v60  ;;  %v3691_v60 = vld [vmem:[%s5081_s6 + $0x20] sm:$0xff]  }
  0x84   : > { %1073 = vmatpush1.bf16.msra.mxu1 %v3625_v61  ;;  %v3692_v61 = vld [vmem:[%s5081_s6 + $0x68] sm:$0xff]  }
  0x85   : > { %1074 = vmatprep.subr.bf16.mxu1 %v3630_v62  ;;  %v3693_v62 = vld [vmem:[%s5081_s6 + $0x28] sm:$0xff]  }
  0x88   : > { %1075 = vmatpush1.bf16.msra.mxu1 %v3628_v63  ;;  %v3694_v63 = vld [vmem:[%s5081_s6 + $0x70] sm:$0xff]  }
  0x89   : > { %1076 = vmatprep.subr.bf16.mxu1 %v3633_v0  ;;  %v3695_v0 = vld [vmem:[%s5081_s6 + $0x30] sm:$0xff]  }
  0x8c   : > { %1077 = vmatpush1.bf16.msra.mxu1 %v3631_v1  ;;  %v3696_v1 = vld [vmem:[%s5081_s6 + $0x78] sm:$0xff]  }
  0x8d   : > { %1087 = vmatprep.subr.bf16.mxu1 %v3636_v2  ;;  %v3697_v2 = vld [vmem:[%s5081_s6 + $0x38] sm:$0xff]  }
 0x122   : > { %v629_v10 = vpop.f32.mrb[0].mxu1 }
 0x123   : > { %v630_v11 = vadd.f32 %v629_v10, %v417_v8  ;;  %v631_v12 = vpop.f32.mrb[1].mxu1  ;;  %v709_v8 = vrot.slane %v4482_v6, %v4321_v5 }
 0x124   : > { %v632_v13 = vadd.f32 %v631_v12, %v421_v9  ;;  %v633_v14 = vpop.f32.mrb[2].mxu1  ;;  %v713_v9 = vrot.slane %v4482_v6, %v4327_v7 }
 0x125   : > { %v636_v15 = vmax.f32 %v630_v11, 0.0  ;;  %v634_v16 = vpop.f32.mrb[3].mxu1 }
 0x126   : > { %v637_v17 = vmax.f32 %v632_v13, 0.0 }
 0x127   : > { %v4334_v20 = vpack.c.bf16 %v636_v15, %v636_v15 }
 0x128   : > { %v639_v18 = vpack.c.bf16 %v637_v17, %v637_v17 }
 0x12a   : > { %1078 = vmatprep.mubr.bf16.mxu1 %v639_v18 }
 0x12b   : > { %1079 = vmatmul.mubr.bf16.vlgmr.msra.gmra.mrb[4].mxu1 %v4334_v20 }
 0x12c   : > { %1088 = vmatpush1.bf16.msra.mxu1 %v3634_v19  ;;  %1119 = vmatprep.mubr.bf16.mxu1 %v639_v18 }
 0x12d   : > { %1089 = vmatprep.subr.bf16.mxu1 %v3639_v21 }
 0x130   : > { %1090 = vmatpush1.bf16.msra.mxu1 %v3637_v22 }
 0x131   : > { %1091 = vmatprep.subr.bf16.mxu1 %v3642_v23 }
 0x134   : > { %1092 = vmatpush1.bf16.msra.mxu1 %v3640_v24 }
 0x135   : > { %1093 = vmatprep.subr.bf16.mxu1 %v3645_v25 }
 0x138   : > { %1094 = vmatpush1.bf16.msra.mxu1 %v3643_v26  ;;  %v1166_v26 = vld [vmem:[%s4492_s21 + $0x8] sm:$0xff] }
 0x139   : > { %1095 = vmatprep.subr.bf16.mxu1 %v3648_v27 }
 0x13c   : > { %1096 = vmatpush1.bf16.msra.mxu1 %v3646_v28  ;;  %v1165_v28 = vld [vmem:[%s4492_s21] sm:$0xff] }
 0x13d   : > { %1097 = vmatprep.subr.bf16.mxu1 %v3651_v29  ;;  %v1169_v29 = vld [vmem:[%s4492_s21 + $0x20] sm:$0xff] }
 0x140   : > { %1098 = vmatpush1.bf16.msra.mxu1 %v3649_v30 }
 0x141   : > { %1099 = vmatprep.subr.bf16.mxu1 %v3654_v31  ;;  %v1170_v31 = vld [vmem:[%s4492_s21 + $0x28] sm:$0xff] }
 0x144   : > { %1100 = vmatpush1.bf16.msra.mxu1 %v3652_v32  ;;  %v1174_v32 = vld [vmem:[%s4492_s21 + $0x48] sm:$0xff] }
 0x145   : > { %1101 = vmatprep.subr.bf16.mxu1 %v3657_v33  ;;  %v1178_v33 = vld [vmem:[%s4492_s21 + $0x68] sm:$0xff] }
 0x148   : > { %1102 = vmatpush1.bf16.msra.mxu1 %v3655_v34 }
 0x149   : > { %1103 = vmatprep.subr.bf16.mxu1 %v3660_v35 }
 0x14c   : > { %1104 = vmatpush1.bf16.msra.mxu1 %v3658_v36 }
 0x14d   : > { %1105 = vmatprep.subr.bf16.mxu1 %v3663_v37 }
 0x150   : > { %1106 = vmatpush1.bf16.msra.mxu1 %v3661_v38 }
 0x151   : > { %1107 = vmatprep.subr.bf16.mxu1 %v3666_v39 }
 0x154   : > { %1108 = vmatpush1.bf16.msra.mxu1 %v3664_v40 }
 0x155   : > { %1109 = vmatprep.subr.bf16.mxu1 %v3669_v41 }
 0x158   : > { %1110 = vmatpush1.bf16.msra.mxu1 %v3667_v42 }
 0x159   : > { %1111 = vmatprep.subr.bf16.mxu1 %v3672_v43  ;;  %v3699_v43 = vld [vmem:[%s5081_s6 + $0x80] sm:$0xff]  }
 0x15c   : > { %1112 = vmatpush1.bf16.msra.mxu1 %v3670_v44 }
 0x15d   : > { %1113 = vmatprep.subr.bf16.mxu1 %v3675_v45  ;;  %v3700_v45 = vld [vmem:[%s5081_s6 + $0xc8] sm:$0xff]  }
 0x160   : > { %1114 = vmatpush1.bf16.msra.mxu1 %v3673_v46 }
 0x161   : > { %1115 = vmatprep.subr.bf16.mxu1 %v3678_v47  ;;  %v1173_v47 = vld [vmem:[%s4492_s21 + $0x40] sm:$0xff] }
 0x164   : > { %1116 = vmatpush1.bf16.msra.mxu1 %v3676_v48  ;;  %v1177_v48 = vld [vmem:[%s4492_s21 + $0x60] sm:$0xff] }
 0x165   : > { %1117 = vmatprep.subr.bf16.mxu1 %v3681_v49  ;;  %v1182_v49 = vld [vmem:[%s4492_s21 + $0x88] sm:$0xf] }
 0x168   : > { %1118 = vmatpush1.bf16.msra.mxu1 %v3679_v50  ;;  %v3701_v50 = vld [vmem:[%s5081_s6 + $0x88] sm:$0xff]  }
 0x169   : > { %3395 = vmatprep.subr.bf16.mxu1 %v3682_v51 }
 0x16b   : > { %1120 = vmatmul.mubr.bf16.vlgmr.msra.gmra.mrb[8].mxu1 %v4334_v20 }
 0x16c   : > { %3396 = vmatpush3.bf16.msra.mxu1 %v3683_v52 }
 0x16d   : > { %3397 = vmatprep.subr.bf16.mxu1 %v3684_v53  ;;  %v3702_v53 = vld [vmem:[%s5081_s6 + $0xd0] sm:$0xff]  }
 0x170   : > { %3398 = vmatpush3.bf16.msra.mxu1 %v3685_v54 }
 0x171   : > { %3399 = vmatprep.subr.bf16.mxu1 %v3686_v55  ;;  %v3703_v55 = vld [vmem:[%s5081_s6 + $0x90] sm:$0xff]  }
 0x174   : > { %3400 = vmatpush3.bf16.msra.mxu1 %v3687_v56 }
 0x175   : > { %3401 = vmatprep.subr.bf16.mxu1 %v3688_v57  ;;  %v3704_v57 = vld [vmem:[%s5081_s6 + $0xd8] sm:$0xff]  }
 0x178   : > { %3402 = vmatpush3.bf16.msra.mxu1 %v3689_v58 }
 0x179   : > { %3403 = vmatprep.subr.bf16.mxu1 %v3690_v59  ;;  %v1181_v59 = vld [vmem:[%s4492_s21 + $0x80] sm:$0xf] }
 0x17c   : > { %3404 = vmatpush3.bf16.msra.mxu1 %v3691_v60  ;;  %v3705_v60 = vld [vmem:[%s5081_s6 + $0x98] sm:$0xff]  }
 0x17d   : > { %3405 = vmatprep.subr.bf16.mxu1 %v3692_v61 }
 0x180   : > { %3406 = vmatpush3.bf16.msra.mxu1 %v3693_v62  ;;  %v3706_v62 = vld [vmem:[%s5081_s6 + $0xe0] sm:$0xff]  }
 0x181   : > { %3407 = vmatprep.subr.bf16.mxu1 %v3694_v63  ;;  %v3707_v63 = vld [vmem:[%s5081_s6 + $0xa0] sm:$0xff]  }
 0x184   : > { %3408 = vmatpush3.bf16.msra.mxu1 %v3695_v0 }
 0x185   : > { %3409 = vmatprep.subr.bf16.mxu1 %v3696_v1  ;;  %v3708_v1 = vld [vmem:[%s5081_s6 + $0xe8] sm:$0xff]  }
 0x188   : > { %3410 = vmatpush3.bf16.msra.mxu1 %v3697_v2  ;;  %v716_v2 = vsub.s32 2, %v4318_v4 }
 0x189   : > { %3429 = vmatprep.subr.bf16.mxu1 %v3698_v3  ;;  %v3709_v3 = vld [vmem:[%s5081_s6 + $0xa8] sm:$0xff]  }
 0x1fe   : > { %v1080_v10 = vpop.f32.mrb[4].mxu1 }
 0x1ff   : > { %v1081_v11 = vadd.f32 %v1080_v10, %v709_v8  ;;  %v1082_v12 = vpop.f32.mrb[5].mxu1  ;;  %v720_v8 = vsub.s32 3, %v4318_v4  ;;  %v717_v10 = vrot.slane %v4482_v6, %v716_v2  ;;  %v3725_v2 = vld [vmem:[%s5083_s8 + $0x30] ss:$8 sps:$4 sm:$0xff]  }
 0x200   : > { %v1083_v13 = vadd.f32 %v1082_v12, %v713_v9  ;;  %v1084_v14 = vpop.f32.mrb[6].mxu1  ;;  %v3710_v9 = vld [vmem:[%s5081_s6 + $0xf0] sm:$0xff]  }
 0x201   : > { %v1128_v15 = vsub.f32 0.0, %v1081_v11  ;;  %v1085_v16 = vpop.f32.mrb[7].mxu1  ;;  %v3711_v11 = vld [vmem:[%s5081_s6 + $0xb0] sm:$0xff]   ;;  %v721_v12 = vrot.slane %v4482_v6, %v720_v8  ;;  %v3728_v8 = vld [vmem:[%s5083_s8 + $0x40] ss:$8 sps:$4 sm:$0xff]  }
 0x202   : > { %v1129_v17 = vsub.f32 0.0, %v1083_v13  ;;  %v3712_v13 = vld [vmem:[%s5081_s6 + $0xf8] sm:$0xff]  }
 0x203   : > { %v1132_v18 = vmul.f32 1.442695, %v1128_v15  ;;  %v3713_v16 = vld [vmem:[%s5081_s6 + $0xb8] sm:$0xff]  }
 0x204   : > { %v1134_v19 = vmul.f32 1.442695, %v1129_v17 }
 0x205   : > { %3930 = vpow2.f32 %v1132_v18 }
 0x206   : > { %3932 = vpow2.f32 %v1134_v19 }
 0x20f   : > { %v3931_v20 = vpop.eup %3930 }
 0x210   : > { %v3933_v21 = vpop.eup %3932  ;;  %v1140_v22 = vadd.f32 1.0, %v3931_v20 }
 0x211   : > { %v1141_v23 = vadd.f32 1.0, %v3933_v21 }
 0x212   : > { %3934 = vrcp.f32 %v1140_v22 }
 0x213   : > { %3936 = vrcp.f32 %v1141_v23 }
 0x21c   : > { %v3935_v24 = vpop.eup %3934 }
 0x21d   : > { %v3937_v25 = vpop.eup %3936  ;;  %v1152_v27 = vrot.slane %v3935_v24, 4  ;;  %v1201_v61 = vmul.f32 %v3935_v24, %v1181_v59  ;;  %v3714_v59 = vld [vmem:[%s5083_s8 + $0x4] ss:$8 sps:$4 sm:$0xff]  }
 0x21e   : > { %v1153_v30 = vrot.slane %v3937_v25, 4  ;;  %v1202_v54 = vmul.f32 %v3937_v25, %v1182_v49  ;;  %v1179_v49 = vld [vmem:[%s4492_s21 + $0x70] sm:$0xff]  ;;  %1706 = vmatprep.subr.bf16.mxu0 %v3714_v59 }
 0x21f   : > { %v1161_v34 = vsel %vm1160_vm0, %v3935_v24, %v1152_v27  ;;  %v1213_v0 = vpack.c.bf16 %v1201_v61, %v1201_v61  ;;  %v3717_v61 = vld [vmem:[%s5083_s8 + $0x14] ss:$8 sps:$4 sm:$0xff]  }
 0x220   : > { %v1162_v35 = vsel %vm1160_vm0, %v3937_v25, %v1153_v30  ;;  %v1185_v36 = vmul.f32 %v1165_v28, %v1161_v34  ;;  %v1189_v37 = vmul.f32 %v1169_v29, %v1161_v34  ;;  %v1193_v51 = vmul.f32 %v1173_v47, %v1161_v34  ;;  %v1168_v29 = vld [vmem:[%s4492_s21 + $0x18] sm:$0xff] }
 0x221   : > { %v1186_v38 = vmul.f32 %v1166_v26, %v1162_v35  ;;  %v1190_v39 = vmul.f32 %v1170_v31, %v1162_v35  ;;  %v1194_v40 = vmul.f32 %v1174_v32, %v1162_v35  ;;  %v1198_v41 = vmul.f32 %v1178_v33, %v1162_v35  ;;  %v1167_v31 = vld [vmem:[%s4492_s21 + $0x10] sm:$0xff]  ;;  %v1176_v35 = vld [vmem:[%s4492_s21 + $0x58] sm:$0xff] }
 0x222   : > { %v1205_v44 = vpack.c.bf16 %v1189_v37, %v1185_v36  ;;  %v1197_v52 = vmul.f32 %v1177_v48, %v1161_v34  ;;  %v1214_v58 = vpack.c.bf16 %v1202_v54, %v1202_v54  ;;  %v1171_v32 = vld [vmem:[%s4492_s21 + $0x30] sm:$0xff]  ;;  %v1172_v34 = vld [vmem:[%s4492_s21 + $0x38] sm:$0xff] }
 0x223   : > { %v1206_v42 = vpack.c.bf16 %v1190_v39, %v1186_v38  ;;  %v1210_v46 = vpack.c.bf16 %v1198_v41, %v1194_v40  ;;  %v1180_v36 = vld [vmem:[%s4492_s21 + $0x78] sm:$0xff]  ;;  %v1175_v48 = vld [vmem:[%s4492_s21 + $0x50] sm:$0xff] }
 0x224   : > { %v1209_v56 = vpack.c.bf16 %v1197_v52, %v1193_v51 }
 0x225   : > { %1512 = vmatprep.mubr.bf16.mxu1 %v1206_v42 }
 0x226   : > { %1513 = vmatmul.mubr.bf16.vlgmr.msra.gmra.mrb[12].mxu1 %v1205_v44 }
 0x227   : > { %1520 = vmatprep.mubr.bf16.mxu1 %v1210_v46  ;;  %3430 = vmatpush3.bf16.msra.mxu1 %v3699_v43 }
 0x228   : > { %3431 = vmatprep.subr.bf16.mxu1 %v3700_v45 }
 0x22b   : > { %3432 = vmatpush3.bf16.msra.mxu1 %v3701_v50  ;;  %v1184_v50 = vld [vmem:[%s4492_s21 + $0x98] sm:$0xf] }
 0x22c   : > { %3433 = vmatprep.subr.bf16.mxu1 %v3702_v53 }
 0x22e   : > { %1521 = vmatmul.mubr.bf16.gmra.mrb[16].mxu1 %v1209_v56  ;;  %v1183_v56 = vld [vmem:[%s4492_s21 + $0x90] sm:$0xf]  ;;  %s365_s21 = sand.u32 1, %s4000_s14  }
 0x22f   : > { %1528 = vmatprep.mubr.bf16.mxu1 %v1214_v58  ;;  %3434 = vmatpush3.bf16.msra.mxu1 %v3703_v55  ;;  %s2982_s30 = sshll.u32 %s365_s21, 3  ;;  %s2893_s11 = scalar_lea.sflag [#allocation3], %s365_s21 }
 0x230   : > { %3435 = vmatprep.subr.bf16.mxu1 %v3704_v57  ;;  %s367_s22 = scalar_lea.vmem [#allocation2], %s2982_s30 }
 0x231   : > { %s2907_s26 = sshll.u32 %s367_s22, 4  ;;  %s5035_s26 = int_to_ptr.vmem [resolvable:$true] %s2907_s26 }
 0x232   : > { %s3946_s12 = scalar_lea.vmem %s5035_s26, 128  ;;  %p3953_p0 = scmp.lt.s32.totalorder %s5035_s26, %s3951_s18 }
 0x233   : > { %3436 = vmatpush3.bf16.msra.mxu1 %v3705_v60  ;;  %v3716_v60 = vld [vmem:[%s5083_s8] ss:$8 sps:$4 sm:$0xff]   ;;  %p3947_p11 = scmp.ne.s32.totalorder %s5035_s26, %s3946_s12  ;;  %p3954_p1 = scmp.lt.s32.totalorder %s3952_s20, %s3946_s12 }
 0x234   : > { %3437 = vmatprep.subr.bf16.mxu1 %v3706_v62  ;;  %1707 = vmatpush1.bf16.msra.mxu0 %v3716_v60  ;;  %v3719_v62 = vld [vmem:[%s5083_s8 + $0x10] ss:$8 sps:$4 sm:$0xff]   ;;  %v3744_v60 = vld [vmem:[%s5083_s8 + $0xa0] ss:$8 sps:$4 sm:$0xff]  }
 0x235   : > { %1708 = vmatprep.subr.bf16.mxu0 %v3717_v61  ;;  %p3948_p12 = pnand %p3947_p11, %p4105_p5  ;;  %p3955_p2 = por %p3954_p1, %p3953_p0 }
 0x236   : > { %1529 = vmatmul.mubr.bf16.gmra.mrb[20].mxu1 %v1213_v0  ;;  %v3722_v0 = vld [vmem:[%s5083_s8 + $0x20] ss:$8 sps:$4 sm:$0xff]  }
 0x237   : > { %3438 = vmatpush3.bf16.msra.mxu1 %v3707_v63  ;;  %v3720_v63 = vld [vmem:[%s5083_s8 + $0x24] ss:$8 sps:$4 sm:$0xff]   ;;  %p3949_p13 = pneg %p3948_p12 }
 0x238   : > { %3439 = vmatprep.subr.bf16.mxu1 %v3708_v1  ;;  %1709 = vmatpush1.bf16.msra.mxu0 %v3719_v62  ;;  %v3723_v1 = vld [vmem:[%s5083_s8 + $0x34] ss:$8 sps:$4 sm:$0xff]  }
 0x239   : > { %1710 = vmatprep.subr.bf16.mxu0 %v3720_v63  ;;  %v3749_v62 = vld [vmem:[%s5083_s8 + $0xb4] ss:$8 sps:$4 sm:$0xff]   ;;  %p3956_p3 = pnand %p3955_p2, %p3949_p13 }
 0x23b   : > { %3440 = vmatpush3.bf16.msra.mxu1 %v3709_v3  ;;  %v3726_v3 = vld [vmem:[%s5083_s8 + $0x44] ss:$8 sps:$4 sm:$0xff]  }
 0x23c   : > { %3441 = vmatprep.subr.bf16.mxu1 %v3710_v9  ;;  %1711 = vmatpush1.bf16.msra.mxu0 %v3722_v0  ;;  %v3729_v9 = vld [vmem:[%s5083_s8 + $0x54] ss:$8 sps:$4 sm:$0xff]  }
 0x23d   : > { %1712 = vmatprep.subr.bf16.mxu0 %v3723_v1 }
 0x23e   : > { %v1121_v4 = vpop.f32.mrb[8].mxu1 }
 0x23f   : > { %v1122_v14 = vadd.f32 %v1121_v4, %v717_v10  ;;  %v1123_v15 = vpop.f32.mrb[9].mxu1  ;;  %3442 = vmatpush3.bf16.msra.mxu1 %v3711_v11  ;;  %v3731_v10 = vld [vmem:[%s5083_s8 + $0x50] ss:$8 sps:$4 sm:$0xff]   ;;  %v3732_v11 = vld [vmem:[%s5083_s8 + $0x64] ss:$8 sps:$4 sm:$0xff]  }
 0x240   : > { %v1124_v17 = vadd.f32 %v1123_v15, %v721_v12  ;;  %v1125_v18 = vpop.f32.mrb[10].mxu1  ;;  %3443 = vmatprep.subr.bf16.mxu1 %v3712_v13  ;;  %1713 = vmatpush1.bf16.msra.mxu0 %v3725_v2  ;;  %v3734_v12 = vld [vmem:[%s5083_s8 + $0x60] ss:$8 sps:$4 sm:$0xff]   ;;  %v3735_v13 = vld [vmem:[%s5083_s8 + $0x74] ss:$8 sps:$4 sm:$0xff]   ;;  %v4010_v15 = vmov 0  }
 0x241   : > { %v1130_v19 = vsub.f32 0.0, %v1122_v14  ;;  %v1126_v20 = vpop.f32.mrb[11].mxu1  ;;  %1714 = vmatprep.subr.bf16.mxu0 %v3726_v3  ;;  %v3737_v4 = vld [vmem:[%s5083_s8 + $0x70] ss:$8 sps:$4 sm:$0xff]   ;;  %v3740_v14 = vld [vmem:[%s5083_s8 + $0x84] ss:$8 sps:$4 sm:$0xff]   ;;  %1738 = vmatprep.mubr.bf16.mxu0 %v4010_v15 }
 0x242   : > { %v1131_v6 = vsub.f32 0.0, %v1124_v17  ;;  %v3747_v3 = vld [vmem:[%s5083_s8 + $0xb0] ss:$8 sps:$4 sm:$0xff]  }
 0x243   : > { %v1136_v21 = vmul.f32 1.442695, %v1130_v19  ;;  %3444 = vmatpush3.bf16.msra.mxu1 %v3713_v16 }
 0x244   : > { %v1138_v22 = vmul.f32 1.442695, %v1131_v6  ;;  %1715 = vmatpush1.bf16.msra.mxu0 %v3728_v8 }
 0x245   : > { %3938 = vpow2.f32 %v1136_v21  ;;  %1716 = vmatprep.subr.bf16.mxu0 %v3729_v9  ;;  %v3083_v21 = vld [vmem:[%s5082_s7] ss:$0 sm:$0xff]  ;;  %v3752_v9 = vld [vmem:[%s5083_s8 + $0xc4] ss:$8 sps:$4 sm:$0xff]  }
 0x246   : > { %3940 = vpow2.f32 %v1138_v22 }
 0x248   : > { %1717 = vmatpush1.bf16.msra.mxu0 %v3731_v10  ;;  %v3750_v10 = vld [vmem:[%s5083_s8 + $0xc0] ss:$8 sps:$4 sm:$0xff]  }
 0x249   : > { %1718 = vmatprep.subr.bf16.mxu0 %v3732_v11  ;;  %v3755_v11 = vld [vmem:[%s5083_s8 + $0xd4] ss:$8 sps:$4 sm:$0xff]  }
 0x24c   : > { %1719 = vmatpush1.bf16.msra.mxu0 %v3734_v12  ;;  %v3753_v12 = vld [vmem:[%s5083_s8 + $0xd0] ss:$8 sps:$4 sm:$0xff]  }
 0x24d   : > { %1720 = vmatprep.subr.bf16.mxu0 %v3735_v13  ;;  %v3758_v13 = vld [vmem:[%s5083_s8 + $0xe4] ss:$8 sps:$4 sm:$0xff]  }
 0x24f   : > { %v3939_v23 = vpop.eup %3938 }
 0x250   : > { %v3941_v24 = vpop.eup %3940  ;;  %v1142_v25 = vadd.f32 1.0, %v3939_v23  ;;  %1721 = vmatpush1.bf16.msra.mxu0 %v3737_v4  ;;  %v3756_v4 = vld [vmem:[%s5083_s8 + $0xe0] ss:$8 sps:$4 sm:$0xff]  }
 0x251   : > { %v1143_v26 = vadd.f32 1.0, %v3941_v24  ;;  %1849 = vmatprep.subr.bf16.mxu0 %v3740_v14  ;;  %v3761_v14 = vld [vmem:[%s5083_s8 + $0xf4] ss:$8 sps:$4 sm:$0xff]  }
 0x252   : > { %3942 = vrcp.f32 %v1142_v25 }
 0x253   : > { %3944 = vrcp.f32 %v1143_v26 }
 0x25c   : > { %v3943_v27 = vpop.eup %3942 }
 0x25d   : > { %v3945_v28 = vpop.eup %3944  ;;  %v1154_v30 = vrot.slane %v3943_v27, 4  ;;  %v1203_v57 = vmul.f32 %v3943_v27, %v1183_v56 }
 0x25e   : > { %v1155_v33 = vrot.slane %v3945_v28, 4  ;;  %v1204_v53 = vmul.f32 %v3945_v28, %v1184_v50  ;;  %v3743_v50 = vld [vmem:[%s5083_s8 + $0x94] ss:$8 sps:$4 sm:$0xff]  }
 0x25f   : > { %v1163_v37 = vsel %vm1160_vm0, %v3943_v27, %v1154_v30  ;;  %v1215_v58 = vpack.c.bf16 %v1203_v57, %v1203_v57 }
 0x260   : > { %v1164_v38 = vsel %vm1160_vm0, %v3945_v28, %v1155_v33  ;;  %v1187_v39 = vmul.f32 %v1167_v31, %v1163_v37  ;;  %v1191_v40 = vmul.f32 %v1171_v32, %v1163_v37  ;;  %v1195_v51 = vmul.f32 %v1175_v48, %v1163_v37 }
 0x261   : > { %v1188_v41 = vmul.f32 %v1168_v29, %v1164_v38  ;;  %v1192_v42 = vmul.f32 %v1172_v34, %v1164_v38  ;;  %v1196_v43 = vmul.f32 %v1176_v35, %v1164_v38  ;;  %v1200_v44 = vmul.f32 %v1180_v36, %v1164_v38 }
 0x262   : > { %v1207_v46 = vpack.c.bf16 %v1191_v40, %v1187_v39  ;;  %v1199_v52 = vmul.f32 %v1179_v49, %v1163_v37  ;;  %v1216_v55 = vpack.c.bf16 %v1204_v53, %v1204_v53 }
 0x263   : > { %v1208_v45 = vpack.c.bf16 %v1192_v42, %v1188_v41  ;;  %v1212_v47 = vpack.c.bf16 %v1200_v44, %v1196_v43 }
 0x264   : > { %v1211_v54 = vpack.c.bf16 %v1199_v52, %v1195_v51 }
 0x265   : > { %1568 = vmatprep.mubr.bf16.mxu1 %v1208_v45 }
 0x266   : > { %1569 = vmatmul.mubr.bf16.vlgmr.msra.gmra.mrb[24].mxu1 %v1207_v46 }
 0x267   : > { %1576 = vmatprep.mubr.bf16.mxu1 %v1212_v47  ;;  %v3738_v47 = vld [vmem:[%s5083_s8 + $0x80] ss:$8 sps:$4 sm:$0xff]  }
 0x26e   : > { %1577 = vmatmul.mubr.bf16.gmra.mrb[28].mxu1 %v1211_v54 }
 0x26f   : > { %1584 = vmatprep.mubr.bf16.mxu1 %v1216_v55  ;;  %v3741_v55 = vld [vmem:[%s5083_s8 + $0x90] ss:$8 sps:$4 sm:$0xff]  }
 0x276   : > { %1585 = vmatmul.mubr.bf16.gmra.mrb[32].mxu1 %v1215_v58  ;;  %v3746_v58 = vld [vmem:[%s5083_s8 + $0xa4] ss:$8 sps:$4 sm:$0xff]  }
 0x2f9   : > { %v3411_v16 = vpop.f32.mrb[12].mxu1 }
 0x2fa   : > { %v3412_v17 = vpop.f32.mrb[13].mxu1 }
 0x2fb   : > { %v3413_v18 = vadd.f32 %v3412_v17, %v3411_v16  ;;  %v3414_v19 = vpop.f32.mrb[14].mxu1  ;;  %v3759_v16 = vld [vmem:[%s5083_s8 + $0xf0] ss:$8 sps:$4 sm:$0xff]   ;;  %v3764_v17 = vld [vmem:[%s5083_s8 + $0x104] ss:$8 sps:$4 sm:$0xff]  }
 0x2fc   : > { %v3415_v20 = vpop.f32.mrb[15].mxu1 }
 0x2fd   : > { %v3416_v6 = vadd.f32 %v3415_v20, %v3414_v19  ;;  %v1515_v39 = vadd.f32 %v3413_v18, %v3083_v21  ;;  %v3762_v18 = vld [vmem:[%s5083_s8 + $0x100] ss:$8 sps:$4 sm:$0xff]   ;;  %v3767_v20 = vld [vmem:[%s5083_s8 + $0x114] ss:$8 sps:$4 sm:$0xff]  }
 0x2ff   : > { %v1518_v22 = vadd.f32 %v3416_v6, %v3083_v21  ;;  %v3765_v6 = vld [vmem:[%s5083_s8 + $0x110] ss:$8 sps:$4 sm:$0xff]  }
 0x301   : > { %v3417_v23 = vpop.f32.mrb[16].mxu1 }
 0x302   : > { %v3418_v24 = vpop.f32.mrb[17].mxu1 }
 0x303   : > { %v3419_v25 = vadd.f32 %v3418_v24, %v3417_v23  ;;  %v3420_v26 = vpop.f32.mrb[18].mxu1  ;;  %v3773_v23 = vld [vmem:[%s5083_s8 + $0x134] ss:$8 sps:$4 sm:$0xff]   ;;  %v3771_v24 = vld [vmem:[%s5083_s8 + $0x130] ss:$8 sps:$4 sm:$0xff]  }
 0x304   : > { %v3421_v27 = vpop.f32.mrb[19].mxu1 }
 0x305   : > { %v1523_v28 = vadd.f32 %v3419_v25, %v3083_v21  ;;  %v3422_v29 = vadd.f32 %v3421_v27, %v3420_v26  ;;  %v3776_v25 = vld [vmem:[%s5083_s8 + $0x144] ss:$8 sps:$4 sm:$0xff]   ;;  %v3774_v26 = vld [vmem:[%s5083_s8 + $0x140] ss:$8 sps:$4 sm:$0xff]   ;;  %v3779_v27 = vld [vmem:[%s5083_s8 + $0x154] ss:$8 sps:$4 sm:$0xff]  }
 0x307   : > { %v1526_v30 = vadd.f32 %v3422_v29, %v3083_v21  ;;  %v3782_v29 = vld [vmem:[%s5083_s8 + $0x164] ss:$8 sps:$4 sm:$0xff]  }
 0x309   : > { %v3423_v31 = vpop.f32.mrb[20].mxu1 }
 0x30a   : > { %v3424_v32 = vpop.f32.mrb[21].mxu1 }
 0x30b   : > { %v3425_v33 = vadd.f32 %v3424_v32, %v3423_v31  ;;  %v3426_v34 = vpop.f32.mrb[22].mxu1  ;;  %v3785_v31 = vld [vmem:[%s5083_s8 + $0x174] ss:$8 sps:$4 sm:$0xff]   ;;  %v3783_v32 = vld [vmem:[%s5083_s8 + $0x170] ss:$8 sps:$4 sm:$0xff]  }
 0x30c   : > { %v3427_v35 = vpop.f32.mrb[23].mxu1  ;;  %v3788_v34 = vld [vmem:[%s5083_s8 + $0x184] ss:$8 sps:$4 sm:$0xff]  }
 0x30d   : > { %v1531_v36 = vadd.f32 %v3425_v33, %v3083_v21  ;;  %v3770_v21 = vld [vmem:[%s5083_s8 + $0x124] ss:$8 sps:$4 sm:$0xff]   ;;  %v3786_v35 = vld [vmem:[%s5083_s8 + $0x180] ss:$8 sps:$4 sm:$0xff]  }
 0x339   : > { %v3445_v37 = vpop.f32.mrb[24].mxu1 }
 0x33a   : > { %v3446_v38 = vpop.f32.mrb[25].mxu1 }
 0x33b   : > { %v3447_v40 = vadd.f32 %v3446_v38, %v3445_v37  ;;  %v3448_v41 = vpop.f32.mrb[26].mxu1  ;;  %v3791_v37 = vld [vmem:[%s5083_s8 + $0x194] ss:$8 sps:$4 sm:$0xff]   ;;  %v3789_v38 = vld [vmem:[%s5083_s8 + $0x190] ss:$8 sps:$4 sm:$0xff]  }
 0x33c   : > { %v3449_v42 = vpop.f32.mrb[27].mxu1 }
 0x33d   : > { %v1571_v43 = vadd.f32 %v3447_v40, %v1515_v39  ;;  %v3450_v44 = vadd.f32 %v3449_v42, %v3448_v41  ;;  %v3794_v39 = vld [vmem:[%s5083_s8 + $0x1a4] ss:$8 sps:$4 sm:$0xff]   ;;  %v3792_v40 = vld [vmem:[%s5083_s8 + $0x1a0] ss:$8 sps:$4 sm:$0xff]   ;;  %v3797_v41 = vld [vmem:[%s5083_s8 + $0x1b4] ss:$8 sps:$4 sm:$0xff]  }
 0x33e   : > { %v3795_v42 = vld [vmem:[%s5083_s8 + $0x1b0] ss:$8 sps:$4 sm:$0xff]  }
 0x33f   : > { %v1592_v45 = vmax.f32 %v1571_v43, 0.0  ;;  %v4622_v46 = vadd.f32 %v3450_v44, %v1518_v22  ;;  %v3768_v22 = vld [vmem:[%s5083_s8 + $0x120] ss:$8 sps:$4 sm:$0xff]   ;;  %v3800_v43 = vld [vmem:[%s5083_s8 + $0x1c4] ss:$8 sps:$4 sm:$0xff]  }
 0x340   : > { %v3798_v44 = vld [vmem:[%s5083_s8 + $0x1c0] ss:$8 sps:$4 sm:$0xff]  }
 0x341   : > { %v1609_v48 = vpack.c.bf16 %v1592_v45, %v1592_v45  ;;  %v3451_v49 = vpop.f32.mrb[28].mxu1  ;;  %v1593_v33 = vmax.f32 %v4622_v46, 0.0  ;;  %v3803_v45 = vld [vmem:[%s5083_s8 + $0x1d4] ss:$8 sps:$4 sm:$0xff]   ;;  %v3801_v46 = vld [vmem:[%s5083_s8 + $0x1d0] ss:$8 sps:$4 sm:$0xff]  }
 0x342   : > { %v3452_v51 = vpop.f32.mrb[29].mxu1 }
 0x343   : > { %v3453_v52 = vadd.f32 %v3452_v51, %v3451_v49  ;;  %v3454_v53 = vpop.f32.mrb[30].mxu1  ;;  %1739 = vmatmul.mubr.bf16.vlgmr.msra.gmra.mrb[0].mxu0 %v1609_v48  ;;  %v1767_v19 = vrot.slane %v1609_v48, 2  ;;  %v3804_v48 = vld [vmem:[%s5083_s8 + $0x1e0] ss:$8 sps:$4 sm:$0xff]   ;;  %v3809_v49 = vld [vmem:[%s5083_s8 + $0x1f4] ss:$8 sps:$4 sm:$0xff]  }
 0x344   : > { %1850 = vmatpush1.bf16.msra.mxu0 %v3738_v47  ;;  %v3455_v54 = vpop.f32.mrb[31].mxu1  ;;  %1881 = vmatprep.mubr.bf16.mxu0 %v4010_v15  ;;  %v3806_v47 = vld [vmem:[%s5083_s8 + $0x1e4] ss:$8 sps:$4 sm:$0xff]  }
 0x345   : > { %v4634_v56 = vadd.f32 %v3453_v52, %v1523_v28  ;;  %v3456_v57 = vadd.f32 %v3455_v54, %v3454_v53  ;;  %1851 = vmatprep.subr.bf16.mxu0 %v3743_v50  ;;  %v3777_v28 = vld [vmem:[%s5083_s8 + $0x150] ss:$8 sps:$4 sm:$0xff]   ;;  %v3812_v51 = vld [vmem:[%s5083_s8 + $0x204] ss:$8 sps:$4 sm:$0xff]   ;;  %v3810_v52 = vld [vmem:[%s5083_s8 + $0x200] ss:$8 sps:$4 sm:$0xff]  }
 0x346   : > { %v3807_v50 = vld [vmem:[%s5083_s8 + $0x1f0] ss:$8 sps:$4 sm:$0xff]   ;;  %v3815_v54 = vld [vmem:[%s5083_s8 + $0x214] ss:$8 sps:$4 sm:$0xff]  }
 0x347   : > { %v4639_v59 = vadd.f32 %v3456_v57, %v1526_v30  ;;  %v3780_v30 = vld [vmem:[%s5083_s8 + $0x160] ss:$8 sps:$4 sm:$0xff]   ;;  %v3818_v57 = vld [vmem:[%s5083_s8 + $0x224] ss:$8 sps:$4 sm:$0xff]  }
 0x348   : > { %1852 = vmatpush1.bf16.msra.mxu0 %v3741_v55  ;;  %v3813_v55 = vld [vmem:[%s5083_s8 + $0x210] ss:$8 sps:$4 sm:$0xff]  }
 0x349   : > { %v3457_v61 = vpop.f32.mrb[32].mxu1  ;;  %1853 = vmatprep.subr.bf16.mxu0 %v3746_v58  ;;  %v3816_v58 = vld [vmem:[%s5083_s8 + $0x220] ss:$8 sps:$4 sm:$0xff]  }
 0x34a   : > { %v3458_v63 = vpop.f32.mrb[33].mxu1 }
 0x34b   : > { %v3459_v0 = vadd.f32 %v3458_v63, %v3457_v61  ;;  %v3460_v1 = vpop.f32.mrb[34].mxu1  ;;  %v3819_v61 = vld [vmem:[%s5083_s8 + $0x230] ss:$8 sps:$4 sm:$0xff]   ;;  %v3822_v63 = vld [vmem:[%s5083_s8 + $0x240] ss:$8 sps:$4 sm:$0xff]  }
 0x34c   : > { %1854 = vmatpush1.bf16.msra.mxu0 %v3744_v60  ;;  %v3461_v2 = vpop.f32.mrb[35].mxu1  ;;  %v3821_v60 = vld [vmem:[%s5083_s8 + $0x234] ss:$8 sps:$4 sm:$0xff]   ;;  %v3825_v1 = vld [vmem:[%s5083_s8 + $0x250] ss:$8 sps:$4 sm:$0xff]  }
 0x34d   : > { %v4650_v8 = vadd.f32 %v3459_v0, %v1531_v36  ;;  %1855 = vmatprep.subr.bf16.mxu0 %v3749_v62  ;;  %v1892_v36 = vpack.c.bf16 %v1593_v33, %v1593_v33  ;;  %v3824_v62 = vld [vmem:[%s5083_s8 + $0x244] ss:$8 sps:$4 sm:$0xff]   ;;  %v3827_v0 = vld [vmem:[%s5083_s8 + $0x254] ss:$8 sps:$4 sm:$0xff]   ;;  %v3864_v33 = vld [vmem:[%s5083_s8 + $0x320] ss:$8 sps:$4 sm:$0xff]  }
 0x34e   : > { %v3830_v2 = vld [vmem:[%s5083_s8 + $0x264] ss:$8 sps:$4 sm:$0xff]  }
 0x34f   : > { %v2051_v53 = vrot.slane %v1892_v36, 2 }
 0x350   : > { %1856 = vmatpush1.bf16.msra.mxu0 %v3747_v3  ;;  %v3828_v3 = vld [vmem:[%s5083_s8 + $0x260] ss:$8 sps:$4 sm:$0xff]  }
 0x351   : > { %1857 = vmatprep.subr.bf16.mxu0 %v3752_v9  ;;  %v3833_v9 = vld [vmem:[%s5083_s8 + $0x274] ss:$8 sps:$4 sm:$0xff]  }
 0x354   : > { %1858 = vmatpush1.bf16.msra.mxu0 %v3750_v10  ;;  %v3831_v10 = vld [vmem:[%s5083_s8 + $0x270] ss:$8 sps:$4 sm:$0xff]  }
 0x355   : > { %1859 = vmatprep.subr.bf16.mxu0 %v3755_v11  ;;  %v1594_v11 = vmax.f32 %v4634_v56, 0.0  ;;  %v3837_v56 = vld [vmem:[%s5083_s8 + $0x290] ss:$8 sps:$4 sm:$0xff]  }
 0x358   : > { %1860 = vmatpush1.bf16.msra.mxu0 %v3753_v12  ;;  %v3836_v12 = vld [vmem:[%s5083_s8 + $0x284] ss:$8 sps:$4 sm:$0xff]  }
 0x359   : > { %1861 = vmatprep.subr.bf16.mxu0 %v3758_v13  ;;  %v3834_v13 = vld [vmem:[%s5083_s8 + $0x280] ss:$8 sps:$4 sm:$0xff]  }
 0x35c   : > { %1862 = vmatpush1.bf16.msra.mxu0 %v3756_v4  ;;  %v2176_v4 = vpack.c.bf16 %v1594_v11, %v1594_v11  ;;  %v3917_v11 = vld [vmem:[%s5083_s8 + $0x434] ss:$8 sps:$4 sm:$0xff]  }
 0x35d   : > { %1863 = vmatprep.subr.bf16.mxu0 %v3761_v14  ;;  %v3839_v14 = vld [vmem:[%s5083_s8 + $0x294] ss:$8 sps:$4 sm:$0xff]  }
 0x360   : > { %1864 = vmatpush1.bf16.msra.mxu0 %v3759_v16  ;;  %v3842_v16 = vld [vmem:[%s5083_s8 + $0x2a4] ss:$8 sps:$4 sm:$0xff]  }
 0x361   : > { %1990 = vmatprep.subr.bf16.mxu0 %v3764_v17  ;;  %v3840_v17 = vld [vmem:[%s5083_s8 + $0x2a0] ss:$8 sps:$4 sm:$0xff]  }
 0x363   : > { %1882 = vmatmul.mubr.bf16.vlgmr.msra.gmra.mrb[0].mxu0 %v1767_v19  ;;  %v3843_v19 = vld [vmem:[%s5083_s8 + $0x2b0] ss:$8 sps:$4 sm:$0xff]  }
 0x364   : > { %1991 = vmatpush1.bf16.msra.mxu0 %v3762_v18  ;;  %2022 = vmatprep.mubr.bf16.mxu0 %v4010_v15  ;;  %v3845_v18 = vld [vmem:[%s5083_s8 + $0x2b4] ss:$8 sps:$4 sm:$0xff]  }
 0x365   : > { %1992 = vmatprep.subr.bf16.mxu0 %v3767_v20  ;;  %v3848_v20 = vld [vmem:[%s5083_s8 + $0x2c4] ss:$8 sps:$4 sm:$0xff]  }
 0x368   : > { %1993 = vmatpush1.bf16.msra.mxu0 %v3765_v6  ;;  %v3846_v6 = vld [vmem:[%s5083_s8 + $0x2c0] ss:$8 sps:$4 sm:$0xff]  }
 0x369   : > { %1994 = vmatprep.subr.bf16.mxu0 %v3770_v21  ;;  %v3851_v21 = vld [vmem:[%s5083_s8 + $0x2d4] ss:$8 sps:$4 sm:$0xff]  }
 0x36c   : > { %1995 = vmatpush1.bf16.msra.mxu0 %v3768_v22  ;;  %v3849_v22 = vld [vmem:[%s5083_s8 + $0x2d0] ss:$8 sps:$4 sm:$0xff]  }
 0x36d   : > { %1996 = vmatprep.subr.bf16.mxu0 %v3773_v23  ;;  %v3854_v23 = vld [vmem:[%s5083_s8 + $0x2e4] ss:$8 sps:$4 sm:$0xff]  }
 0x370   : > { %1997 = vmatpush1.bf16.msra.mxu0 %v3771_v24  ;;  %v3852_v24 = vld [vmem:[%s5083_s8 + $0x2e0] ss:$8 sps:$4 sm:$0xff]  }
 0x371   : > { %1998 = vmatprep.subr.bf16.mxu0 %v3776_v25  ;;  %v3857_v25 = vld [vmem:[%s5083_s8 + $0x2f4] ss:$8 sps:$4 sm:$0xff]  }
 0x374   : > { %1999 = vmatpush1.bf16.msra.mxu0 %v3774_v26  ;;  %v3855_v26 = vld [vmem:[%s5083_s8 + $0x2f0] ss:$8 sps:$4 sm:$0xff]  }
 0x375   : > { %2000 = vmatprep.subr.bf16.mxu0 %v3779_v27  ;;  %v3860_v27 = vld [vmem:[%s5083_s8 + $0x304] ss:$8 sps:$4 sm:$0xff]  }
 0x378   : > { %2001 = vmatpush1.bf16.msra.mxu0 %v3777_v28  ;;  %v3858_v28 = vld [vmem:[%s5083_s8 + $0x300] ss:$8 sps:$4 sm:$0xff]  }
 0x379   : > { %2002 = vmatprep.subr.bf16.mxu0 %v3782_v29  ;;  %v2335_v29 = vrot.slane %v2176_v4, 2 }
 0x37c   : > { %2003 = vmatpush1.bf16.msra.mxu0 %v3780_v30  ;;  %v3863_v30 = vld [vmem:[%s5083_s8 + $0x314] ss:$8 sps:$4 sm:$0xff]  }
 0x37d   : > { %2004 = vmatprep.subr.bf16.mxu0 %v3785_v31  ;;  %v3861_v31 = vld [vmem:[%s5083_s8 + $0x310] ss:$8 sps:$4 sm:$0xff]  }
 0x380   : > { %2005 = vmatpush1.bf16.msra.mxu0 %v3783_v32  ;;  %v3866_v32 = vld [vmem:[%s5083_s8 + $0x324] ss:$8 sps:$4 sm:$0xff]  }
 0x381   : > { %2133 = vmatprep.subr.bf16.mxu0 %v3788_v34  ;;  %v3869_v34 = vld [vmem:[%s5083_s8 + $0x334] ss:$8 sps:$4 sm:$0xff]  }
 0x383   : > { %2023 = vmatmul.mubr.bf16.vlgmr.msra.gmra.mrb[0].mxu0 %v1892_v36  ;;  %v3872_v36 = vld [vmem:[%s5083_s8 + $0x344] ss:$8 sps:$4 sm:$0xff]  }
 0x384   : > { %2134 = vmatpush1.bf16.msra.mxu0 %v3786_v35  ;;  %2165 = vmatprep.mubr.bf16.mxu0 %v4010_v15  ;;  %v3867_v35 = vld [vmem:[%s5083_s8 + $0x330] ss:$8 sps:$4 sm:$0xff]  }
 0x385   : > { %2135 = vmatprep.subr.bf16.mxu0 %v3791_v37  ;;  %v3870_v37 = vld [vmem:[%s5083_s8 + $0x340] ss:$8 sps:$4 sm:$0xff]  }
 0x388   : > { %2136 = vmatpush1.bf16.msra.mxu0 %v3789_v38  ;;  %v3875_v38 = vld [vmem:[%s5083_s8 + $0x354] ss:$8 sps:$4 sm:$0xff]  }
 0x389   : > { %2137 = vmatprep.subr.bf16.mxu0 %v3794_v39  ;;  %v3873_v39 = vld [vmem:[%s5083_s8 + $0x350] ss:$8 sps:$4 sm:$0xff]  }
 0x38c   : > { %2138 = vmatpush1.bf16.msra.mxu0 %v3792_v40  ;;  %v3878_v40 = vld [vmem:[%s5083_s8 + $0x364] ss:$8 sps:$4 sm:$0xff]  }
 0x38d   : > { %2139 = vmatprep.subr.bf16.mxu0 %v3797_v41  ;;  %v3876_v41 = vld [vmem:[%s5083_s8 + $0x360] ss:$8 sps:$4 sm:$0xff]  }
 0x390   : > { %2140 = vmatpush1.bf16.msra.mxu0 %v3795_v42  ;;  %v3881_v42 = vld [vmem:[%s5083_s8 + $0x374] ss:$8 sps:$4 sm:$0xff]  }
 0x391   : > { %2141 = vmatprep.subr.bf16.mxu0 %v3800_v43  ;;  %v3879_v43 = vld [vmem:[%s5083_s8 + $0x370] ss:$8 sps:$4 sm:$0xff]  }
 0x394   : > { %2142 = vmatpush1.bf16.msra.mxu0 %v3798_v44  ;;  %v1595_v44 = vmax.f32 %v4639_v59, 0.0  ;;  %v3885_v59 = vld [vmem:[%s5083_s8 + $0x390] ss:$8 sps:$4 sm:$0xff]  }
 0x395   : > { %2143 = vmatprep.subr.bf16.mxu0 %v3803_v45  ;;  %v3884_v45 = vld [vmem:[%s5083_s8 + $0x384] ss:$8 sps:$4 sm:$0xff]  }
 0x398   : > { %2144 = vmatpush1.bf16.msra.mxu0 %v3801_v46  ;;  %v3882_v46 = vld [vmem:[%s5083_s8 + $0x380] ss:$8 sps:$4 sm:$0xff]  }
 0x399   : > { %2145 = vmatprep.subr.bf16.mxu0 %v3806_v47  ;;  %v2460_v47 = vpack.c.bf16 %v1595_v44, %v1595_v44 }
 0x39c   : > { %2146 = vmatpush1.bf16.msra.mxu0 %v3804_v48  ;;  %v3887_v48 = vld [vmem:[%s5083_s8 + $0x394] ss:$8 sps:$4 sm:$0xff]  }
 0x39d   : > { %2147 = vmatprep.subr.bf16.mxu0 %v3809_v49  ;;  %v3890_v49 = vld [vmem:[%s5083_s8 + $0x3a4] ss:$8 sps:$4 sm:$0xff]  }
 0x3a0   : > { %2148 = vmatpush1.bf16.msra.mxu0 %v3807_v50  ;;  %v3888_v50 = vld [vmem:[%s5083_s8 + $0x3a0] ss:$8 sps:$4 sm:$0xff]  }
 0x3a1   : > { %2274 = vmatprep.subr.bf16.mxu0 %v3812_v51  ;;  %v3893_v51 = vld [vmem:[%s5083_s8 + $0x3b4] ss:$8 sps:$4 sm:$0xff]  }
 0x3a3   : > { %2166 = vmatmul.mubr.bf16.vlgmr.msra.gmra.mrb[0].mxu0 %v2051_v53  ;;  %v3896_v53 = vld [vmem:[%s5083_s8 + $0x3c4] ss:$8 sps:$4 sm:$0xff]  }
 0x3a4   : > { %2275 = vmatpush1.bf16.msra.mxu0 %v3810_v52  ;;  %2306 = vmatprep.mubr.bf16.mxu0 %v4010_v15  ;;  %v3891_v52 = vld [vmem:[%s5083_s8 + $0x3b0] ss:$8 sps:$4 sm:$0xff]  }
 0x3a5   : > { %2276 = vmatprep.subr.bf16.mxu0 %v3815_v54  ;;  %v3894_v54 = vld [vmem:[%s5083_s8 + $0x3c0] ss:$8 sps:$4 sm:$0xff]  }
 0x3a8   : > { %2277 = vmatpush1.bf16.msra.mxu0 %v3813_v55  ;;  %v3899_v55 = vld [vmem:[%s5083_s8 + $0x3d4] ss:$8 sps:$4 sm:$0xff]  }
 0x3a9   : > { %2278 = vmatprep.subr.bf16.mxu0 %v3818_v57  ;;  %v3897_v57 = vld [vmem:[%s5083_s8 + $0x3d0] ss:$8 sps:$4 sm:$0xff]  }
 0x3ac   : > { %2279 = vmatpush1.bf16.msra.mxu0 %v3816_v58  ;;  %v3902_v58 = vld [vmem:[%s5083_s8 + $0x3e4] ss:$8 sps:$4 sm:$0xff]  }
 0x3ad   : > { %2280 = vmatprep.subr.bf16.mxu0 %v3821_v60  ;;  %v3900_v60 = vld [vmem:[%s5083_s8 + $0x3e0] ss:$8 sps:$4 sm:$0xff]  }
 0x3b0   : > { %2281 = vmatpush1.bf16.msra.mxu0 %v3819_v61  ;;  %v3905_v61 = vld [vmem:[%s5083_s8 + $0x3f4] ss:$8 sps:$4 sm:$0xff]  }
 0x3b1   : > { %2282 = vmatprep.subr.bf16.mxu0 %v3824_v62  ;;  %v3903_v62 = vld [vmem:[%s5083_s8 + $0x3f0] ss:$8 sps:$4 sm:$0xff]  }
 0x3b4   : > { %2283 = vmatpush1.bf16.msra.mxu0 %v3822_v63  ;;  %v3908_v63 = vld [vmem:[%s5083_s8 + $0x404] ss:$8 sps:$4 sm:$0xff]  }
 0x3b5   : > { %2284 = vmatprep.subr.bf16.mxu0 %v3827_v0  ;;  %v3906_v0 = vld [vmem:[%s5083_s8 + $0x400] ss:$8 sps:$4 sm:$0xff]  }
 0x3b8   : > { %2285 = vmatpush1.bf16.msra.mxu0 %v3825_v1  ;;  %v2619_v1 = vrot.slane %v2460_v47, 2 }
 0x3b9   : > { %2286 = vmatprep.subr.bf16.mxu0 %v3830_v2  ;;  %v3911_v2 = vld [vmem:[%s5083_s8 + $0x414] ss:$8 sps:$4 sm:$0xff]  }
 0x3bc   : > { %2287 = vmatpush1.bf16.msra.mxu0 %v3828_v3  ;;  %v3909_v3 = vld [vmem:[%s5083_s8 + $0x410] ss:$8 sps:$4 sm:$0xff]  }
 0x3bd   : > { %2288 = vmatprep.subr.bf16.mxu0 %v3833_v9  ;;  %v3914_v9 = vld [vmem:[%s5083_s8 + $0x424] ss:$8 sps:$4 sm:$0xff]  }
 0x3c0   : > { %2289 = vmatpush1.bf16.msra.mxu0 %v3831_v10  ;;  %v3912_v10 = vld [vmem:[%s5083_s8 + $0x420] ss:$8 sps:$4 sm:$0xff]  }
 0x3c1   : > { %2417 = vmatprep.subr.bf16.mxu0 %v3836_v12  ;;  %v3920_v12 = vld [vmem:[%s5083_s8 + $0x444] ss:$8 sps:$4 sm:$0xff]  }
 0x3c3   : > { %2307 = vmatmul.mubr.bf16.vlgmr.msra.gmra.mrb[0].mxu0 %v2176_v4  ;;  %v3923_v4 = vld [vmem:[%s5083_s8 + $0x454] ss:$8 sps:$4 sm:$0xff]  }
 0x3c4   : > { %2418 = vmatpush1.bf16.msra.mxu0 %v3834_v13  ;;  %2449 = vmatprep.mubr.bf16.mxu0 %v4010_v15  ;;  %v3918_v13 = vld [vmem:[%s5083_s8 + $0x440] ss:$8 sps:$4 sm:$0xff]  }
 0x3c5   : > { %2419 = vmatprep.subr.bf16.mxu0 %v3839_v14  ;;  %v3921_v14 = vld [vmem:[%s5083_s8 + $0x450] ss:$8 sps:$4 sm:$0xff]  }
 0x3c8   : > { %2420 = vmatpush1.bf16.msra.mxu0 %v3837_v56  ;;  %v3926_v56 = vld [vmem:[%s5083_s8 + $0x464] ss:$8 sps:$4 sm:$0xff]  }
 0x3c9   : > { %2421 = vmatprep.subr.bf16.mxu0 %v3842_v16  ;;  %v3924_v16 = vld [vmem:[%s5083_s8 + $0x460] ss:$8 sps:$4 sm:$0xff]  }
 0x3cc   : > { %2422 = vmatpush1.bf16.msra.mxu0 %v3840_v17  ;;  %v3929_v17 = vld [vmem:[%s5083_s8 + $0x474] ss:$8 sps:$4 sm:$0xff]  }
 0x3cd   : > { %2423 = vmatprep.subr.bf16.mxu0 %v3845_v18  ;;  %v3927_v18 = vld [vmem:[%s5083_s8 + $0x470] ss:$8 sps:$4 sm:$0xff]  }
 0x3d0   : > { %2424 = vmatpush1.bf16.msra.mxu0 %v3843_v19  ;;  %v1596_v19 = vmax.f32 %v4650_v8, 0.0 }
 0x3d1   : > { %2425 = vmatprep.subr.bf16.mxu0 %v3848_v20 }
 0x3d2   : > { %v2744_v20 = vpack.c.bf16 %v1596_v19, %v1596_v19 }
 0x3d4   : > { %2426 = vmatpush1.bf16.msra.mxu0 %v3846_v6  ;;  %v1597_v6 = vld [vmem:[%s5084_s9] sm:$0x3] }
 0x3d5   : > { %2427 = vmatprep.subr.bf16.mxu0 %v3851_v21  ;;  %v1602_v21 = vrot.slane %v1597_v6, %v4321_v5 }
 0x3d8   : > { %2428 = vmatpush1.bf16.msra.mxu0 %v3849_v22  ;;  %v1606_v22 = vrot.slane %v1597_v6, %v4327_v7 }
 0x3d9   : > { %2429 = vmatprep.subr.bf16.mxu0 %v3854_v23 }
 0x3dc   : > { %2430 = vmatpush1.bf16.msra.mxu0 %v3852_v24 }
 0x3dd   : > { %2431 = vmatprep.subr.bf16.mxu0 %v3857_v25 }
 0x3e0   : > { %2432 = vmatpush1.bf16.msra.mxu0 %v3855_v26 }
 0x3e1   : > { %2558 = vmatprep.subr.bf16.mxu0 %v3860_v27 }
 0x3e3   : > { %2450 = vmatmul.mubr.bf16.vlgmr.msra.gmra.mrb[0].mxu0 %v2335_v29 }
 0x3e4   : > { %2559 = vmatpush1.bf16.msra.mxu0 %v3858_v28  ;;  %2590 = vmatprep.mubr.bf16.mxu0 %v4010_v15 }
 0x3e5   : > { %2560 = vmatprep.subr.bf16.mxu0 %v3863_v30 }
 0x3e8   : > { %2561 = vmatpush1.bf16.msra.mxu0 %v3861_v31 }
 0x3e9   : > { %2562 = vmatprep.subr.bf16.mxu0 %v3866_v32 }
 0x3ec   : > { %2563 = vmatpush1.bf16.msra.mxu0 %v3864_v33 }
 0x3ed   : > { %2564 = vmatprep.subr.bf16.mxu0 %v3869_v34 }
 0x3f0   : > { %2565 = vmatpush1.bf16.msra.mxu0 %v3867_v35 }
 0x3f1   : > { %2566 = vmatprep.subr.bf16.mxu0 %v3872_v36 }
 0x3f4   : > { %2567 = vmatpush1.bf16.msra.mxu0 %v3870_v37 }
 0x3f5   : > { %2568 = vmatprep.subr.bf16.mxu0 %v3875_v38 }
 0x3f8   : > { %2569 = vmatpush1.bf16.msra.mxu0 %v3873_v39 }
 0x3f9   : > { %2570 = vmatprep.subr.bf16.mxu0 %v3878_v40 }
 0x3fc   : > { %2571 = vmatpush1.bf16.msra.mxu0 %v3876_v41 }
 0x3fd   : > { %2572 = vmatprep.subr.bf16.mxu0 %v3881_v42 }
 0x400   : > { %2573 = vmatpush1.bf16.msra.mxu0 %v3879_v43 }
 0x401   : > { %2701 = vmatprep.subr.bf16.mxu0 %v3884_v45 }
 0x403   : > { %2591 = vmatmul.mubr.bf16.vlgmr.msra.gmra.mrb[0].mxu0 %v2460_v47 }
 0x404   : > { %2702 = vmatpush1.bf16.msra.mxu0 %v3882_v46  ;;  %2733 = vmatprep.mubr.bf16.mxu0 %v4010_v15 }
 0x405   : > { %2703 = vmatprep.subr.bf16.mxu0 %v3887_v48 }
 0x408   : > { %2704 = vmatpush1.bf16.msra.mxu0 %v3885_v59 }
 0x409   : > { %2705 = vmatprep.subr.bf16.mxu0 %v3890_v49 }
 0x40c   : > { %2706 = vmatpush1.bf16.msra.mxu0 %v3888_v50 }
 0x40d   : > { %2707 = vmatprep.subr.bf16.mxu0 %v3893_v51 }
 0x410   : > { %2708 = vmatpush1.bf16.msra.mxu0 %v3891_v52 }
 0x411   : > { %2709 = vmatprep.subr.bf16.mxu0 %v3896_v53 }
 0x414   : > { %2710 = vmatpush1.bf16.msra.mxu0 %v3894_v54 }
 0x415   : > { %2711 = vmatprep.subr.bf16.mxu0 %v3899_v55 }
 0x418   : > { %2712 = vmatpush1.bf16.msra.mxu0 %v3897_v57 }
 0x419   : > { %2713 = vmatprep.subr.bf16.mxu0 %v3902_v58 }
 0x41c   : > { %2714 = vmatpush1.bf16.msra.mxu0 %v3900_v60 }
 0x41d   : > { %2715 = vmatprep.subr.bf16.mxu0 %v3905_v61 }
 0x420   : > { %2716 = vmatpush1.bf16.msra.mxu0 %v3903_v62 }
 0x421   : > { %2842 = vmatprep.subr.bf16.mxu0 %v3908_v63 }
 0x423   : > { %2734 = vmatmul.mubr.bf16.vlgmr.msra.gmra.mrb[0].mxu0 %v2619_v1 }
 0x424   : > { %2843 = vmatpush1.bf16.msra.mxu0 %v3906_v0  ;;  %2874 = vmatprep.mubr.bf16.mxu0 %v4010_v15  ;;  %v3915_v15 = vld [vmem:[%s5083_s8 + $0x430] ss:$8 sps:$4 sm:$0xff]  }
 0x425   : > { %2844 = vmatprep.subr.bf16.mxu0 %v3911_v2 }
 0x428   : > { %2845 = vmatpush1.bf16.msra.mxu0 %v3909_v3 }
 0x429   : > { %2846 = vmatprep.subr.bf16.mxu0 %v3914_v9 }
 0x42c   : > { %2847 = vmatpush1.bf16.msra.mxu0 %v3912_v10 }
 0x42d   : > { %2848 = vmatprep.subr.bf16.mxu0 %v3917_v11 }
 0x430   : > { %2849 = vmatpush1.bf16.msra.mxu0 %v3915_v15 }
 0x431   : > { %2850 = vmatprep.subr.bf16.mxu0 %v3920_v12 }
 0x434   : > { %2851 = vmatpush1.bf16.msra.mxu0 %v3918_v13 }
 0x435   : > { %2852 = vmatprep.subr.bf16.mxu0 %v3923_v4 }
 0x438   : > { %2853 = vmatpush1.bf16.msra.mxu0 %v3921_v14 }
 0x439   : > { %2854 = vmatprep.subr.bf16.mxu0 %v3926_v56 }
 0x43c   : > { %2855 = vmatpush1.bf16.msra.mxu0 %v3924_v16 }
 0x43d   : > { %2856 = vmatprep.subr.bf16.mxu0 %v3929_v17 }
 0x440   : > { %2857 = vmatpush1.bf16.msra.mxu0 %v3927_v18 }
 0x443   : > { %2875 = vmatmul.mubr.bf16.vlgmr.msra.gmra.mrb[0].mxu0 %v2744_v20 }
 0x516   : > { %v2876_v23 = vpop.f32.mrb[0].mxu0 }
 0x517   : > { %v3463_v24 = vadd.f32 %v2876_v23, %v1602_v21  ;;  %v2878_v25 = vpop.f32.mrb[1].mxu0 }
 0x518   : > { %v3464_v8 = vadd.f32 %v2878_v25, %v1606_v22  ;;  %v2880_v26 = vpop.f32.mrb[2].mxu0 }
 0x519   : > { %v2885_v27 = vmax.f32 %v3463_v24, 0.0  ;;  %v2881_v28 = vpop.f32.mrb[3].mxu0 }
 0x51a   : > { %v2886_v29 = vmax.f32 %v3464_v8, 0.0 }
 0x51c   : > { %v2889_v30 = vcombine.low %v2885_v27, %v2886_v29 }
 0x51e   : > { %2891 = vst [vmem:[%s367_s22] sm:$0xff] %v2889_v30 }
 0x51f   : > { %3959 = shalt.err (!%p3956_p3)
}
 0x520   : > { %s3960_s25 = scalar_lea.hbm %s5033_s29, 128  ;;  %s3964_s15 = scalar_lea.hbm %s5085_s10, 256 }
 0x521   : > { %p3961_p4 = scmp.ne.s32.totalorder %s5033_s29, %s3960_s25  ;;  %p3965_p9 = scmp.lt.u32.totalorder %s5033_s29, %s5085_s10 }
 0x522   : > { %p3966_p10 = scmp.lt.u32.totalorder %s3964_s15, %s3960_s25  ;;  %p3968_p12 = scmp.lt.u32.totalorder %s3960_s25, %s5033_s29 }
 0x523   : > { %p3962_p7 = pnand %p3961_p4, %p4105_p5 }
 0x524   : > { %p3967_p11 = por %p3966_p10, %p3965_p9 }
 0x525   : > { %p3963_p8 = pneg %p3962_p7 }
 0x526   : > { %p3969_p13 = por %p3968_p12, %p3967_p11 }
 0x528   : > { %p3970_p0 = pnand %p3969_p13, %p3963_p8 }
 0x52a   : > { %3973 = shalt.err (!%p3970_p0)
}
 0x52b   : > { %3498 = dma.vmem_to_hbm [thread:$0]  (%p4105_p5), %s5035_s26, 128, %s5033_s29, %s2893_s11  }
 0x52c PF: > { %p3504_p1 = scmp.ge.s32.totalorder %s4008_s16, 2  ;;  %s2919_s28 = sand.u32 1, %s3996_s13  }
 0x52d   : > { %s2920_s12 = scalar_lea.sflag [#allocation3], %s2919_s28 }
 0x52e   : > { %p3501_p2 = pnand %p3504_p1, %p4109_p6 }
 0x530   : > { %3991 = dma.done.wait (!%p3501_p2), %s2920_s12, 128  }
 0x531   : > { %3993 = vsyncadd (!%p3501_p2), %s2920_s12, 4294967168  ;;  %s5091_s17 = sld [smem:[#allocation5_spill]]  ;;  %s5092_s15 = sld [smem:[#allocation6_spill]] }
 0x532   : > { %p20_p3 = scmp.ge.s32.totalorder %s4092_s19, 4   ;;  %s5093_s13 = smov %s4000_s14 }
 0x533   : > { %s5095_s16 = smov %s4092_s19 }
 0x534   :  { %22 = sbr.rel (!%p20_p3) target bundleno = 3 (0x3), region = 106 }
 0x537   : > { %s5094_s14 = smov %s5091_s17 }
 0x53b   :  { %2925 = vsyncpa [#allocation3], 1 }
 0x53c   :  { %2927 = vsyncpa [#allocation3 + $0x1], 1 }

</bundles_post_ra>
